<compile_context>
chip_gen: v6e
topology: v6e:2x2x1
jax: 0.10.0
libtpu: 0.0.40
codegen_flags: <defaults>
</compile_context>

<pallas_src>
import functools
import math

import jax
import jax.numpy as jnp
from jax import lax
from jax.experimental import pallas as pl
from jax.experimental.pallas import tpu as pltpu


# ----------------------------- in-kernel helpers -----------------------------
def _layernorm(x, g, b, eps=1e-6):
    # eps=1e-6 matches UER-py's LayerNorm default.
    mu = jnp.mean(x, axis=-1, keepdims=True)
    var = jnp.mean((x - mu) ** 2, axis=-1, keepdims=True)
    return (x - mu) * lax.rsqrt(var + eps) * g + b


def _gelu(x):
    # TODO(synk): UER's "gelu" is the exact erf form; the tanh approximation is
    # used because erf has no guaranteed Mosaic lowering (tiny numeric delta).
    c = math.sqrt(2.0 / math.pi)
    return 0.5 * x * (1.0 + jnp.tanh(c * (x + 0.044715 * x * x * x)))


# --------------------------------- kernel ------------------------------------
def bert_layers_kernel(
    x_emb_ref, bias_ref, segw_ref, embg_ref, embb_ref,
    wq_ref, bq_ref, wk_ref, bk_ref, wv_ref, bv_ref, wo_ref, bo_ref,
    ln1g_ref, ln1b_ref, w1_ref, b1_ref, w2_ref, b2_ref, ln2g_ref, ln2b_ref,
    pool_ref, x_sc, ctx_sc, *, num_heads):
    """Whole post-norm BERT encoder + fused UER pooling("mean").

    grid = (batch_block, layer). The residual stream lives in x_sc (f32 VMEM)
    across the layer axis; only the pooled features are written to HBM.
    """
    l = pl.program_id(1)
    n_layers = pl.num_programs(1)
    bb, S, H = x_emb_ref.shape
    dh = H // num_heads
    BS = bb * S
    scale = 1.0 / math.sqrt(dh)

    # ---- layer-0 prologue: fused embedding LayerNorm -> resident residual ----
    @pl.when(l == 0)
    def _init():
        emb = x_emb_ref[...].reshape(BS, H)                      # (bb*S, H) f32
        x_sc[...] = _layernorm(emb, embg_ref[...], embb_ref[...])

    x = x_sc[...]                                                # (BS, H) f32
    xb = x.astype(jnp.bfloat16)                                  # one cast per (b, l) step

    # Lane-dense full-width projections: bf16 MXU operands, f32 accumulation.
    q = (jnp.dot(xb, wq_ref[0], preferred_element_type=jnp.float32)
         + bq_ref[0]) * scale                                    # scale folded into q
    k = jnp.dot(xb, wk_ref[0], preferred_element_type=jnp.float32) + bk_ref[0]
    v = jnp.dot(xb, wv_ref[0], preferred_element_type=jnp.float32) + bv_ref[0]
    qb = q.astype(jnp.bfloat16).reshape(bb, S, H)
    kb = k.astype(jnp.bfloat16).reshape(bb, S, H)
    vb = v.astype(jnp.bfloat16).reshape(bb, S, H)
    bias = bias_ref[...]                                         # (bb, 1, S): 0 valid / -1e4 pad

    # Per-head attention (static head loop, batched over the bb resident rows).
    # Each head's context is slice-written into the bf16 ctx scratch; the
    # output projection is ONE (BS,H)@(H,H) matmul below (no per-head f32 RMW).
    # TODO(synk): for S >= ~1024, tile the key axis (flash-style online softmax)
    # instead of materializing the full (S,S) score matrix per head.
    for h in range(num_heads):
        lo, hi = h * dh, (h + 1) * dh
        s = jnp.einsum('bqd,bkd->bqk', qb[:, :, lo:hi], kb[:, :, lo:hi],
                       preferred_element_type=jnp.float32)       # (bb, S, S)
        s = s + bias
        s = s - jnp.max(s, axis=-1, keepdims=True)
        p = jnp.exp(s)
        # approx reciprocal: EUP slot, rows sum to 1 within ~1e-3 (validated OK).
        p = p * pl.reciprocal(jnp.sum(p, axis=-1, keepdims=True), approx=True)
        ctx = jnp.einsum('bqk,bkd->bqd', p.astype(jnp.bfloat16), vb[:, :, lo:hi],
                         preferred_element_type=jnp.float32)     # (bb, S, dh)
        ctx_sc[:, lo:hi] = ctx.reshape(BS, dh).astype(jnp.bfloat16)

    # Single lane-dense output projection + post-norm residual blocks.
    attn = jnp.dot(ctx_sc[...], wo_ref[0],
                   preferred_element_type=jnp.float32) + bo_ref[0]
    x1 = _layernorm(x + attn, ln1g_ref[0], ln1b_ref[0])
    ff = jnp.dot(x1.astype(jnp.bfloat16), w1_ref[0],
                 preferred_element_type=jnp.float32) + b1_ref[0]
    ff = _gelu(ff)                                               # f32 (v5e-safe)
    ff = jnp.dot(ff.astype(jnp.bfloat16), w2_ref[0],
                 preferred_element_type=jnp.float32) + b2_ref[0]
    out = _layernorm(x1 + ff, ln2g_ref[0], ln2b_ref[0])
    x_sc[...] = out                                              # residual stays in VMEM

    # ---- last-layer epilogue: fused UER pooling("mean") as an MXU matvec ----
    @pl.when(l == n_layers - 1)
    def _pool():
        segw = segw_ref[...]                                     # (bb, 1, S) raw seg (UER semantics)
        out3 = out.reshape(bb, S, H)
        num = jnp.einsum('bxs,bsh->bxh', segw, out3,
                         preferred_element_type=jnp.float32)     # (bb, 1, H)
        den = jnp.sum(segw, axis=-1, keepdims=True)              # (bb, 1, 1)
        # Guard only protects degenerate all-pad rows from inf/NaN.
        pool_ref[...] = num / jnp.maximum(den, 1e-6)


# --------------------------------- wrapper -----------------------------------
def bert_encode_pool(emb, bias, segw, params, *, num_heads, block_b=1):
    B, S, H = emb.shape
    enc = params["enc"]
    L = enc["wq"].shape[0]
    F = enc["w1"].shape[2]
    assert B % block_b == 0 and H % num_heads == 0
    bb = block_b
    nB = B // bb

    bmap = lambda b, l: (b, 0, 0)      # per-batch-block, resident across layers
    lmap = lambda b, l: (l, 0, 0)      # per-layer weights (pipelined prefetch)
    cmap = lambda b, l: (0, 0)         # constants (embedding LN params)

    in_specs = [
        pl.BlockSpec((bb, S, H), bmap),      # summed embeddings
        pl.BlockSpec((bb, 1, S), bmap),      # additive attention bias
        pl.BlockSpec((bb, 1, S), bmap),      # pooling weights (lane-dense)
        pl.BlockSpec((1, H), cmap),          # emb LN gamma
        pl.BlockSpec((1, H), cmap),          # emb LN beta
        pl.BlockSpec((1, H, H), lmap), pl.BlockSpec((1, 1, H), lmap),   # wq, bq
        pl.BlockSpec((1, H, H), lmap), pl.BlockSpec((1, 1, H), lmap),   # wk, bk
        pl.BlockSpec((1, H, H), lmap), pl.BlockSpec((1, 1, H), lmap),   # wv, bv
        pl.BlockSpec((1, H, H), lmap), pl.BlockSpec((1, 1, H), lmap),   # wo, bo
        pl.BlockSpec((1, 1, H), lmap), pl.BlockSpec((1, 1, H), lmap),   # ln1 g, b
        pl.BlockSpec((1, H, F), lmap), pl.BlockSpec((1, 1, F), lmap),   # w1, b1
        pl.BlockSpec((1, F, H), lmap), pl.BlockSpec((1, 1, H), lmap),   # w2, b2
        pl.BlockSpec((1, 1, H), lmap), pl.BlockSpec((1, 1, H), lmap),   # ln2 g, b
    ]

    # VMEM budget derived from the actual chip: ~48 MiB on v7x (64 MiB VMEM),
    # ~96 MiB on v5e/v6e (128 MiB VMEM).
    try:
        vmem_cap = getattr(pltpu.get_tpu_info(), "vmem_capacity_bytes",
                           128 * 1024 * 1024)
    except Exception:
        vmem_cap = 128 * 1024 * 1024
    vmem_limit = int(min(96 * 1024 * 1024, (vmem_cap * 3) // 4))

    pooled = pl.pallas_call(
        functools.partial(bert_layers_kernel, num_heads=num_heads),
        out_shape=jax.ShapeDtypeStruct((B, 1, H), jnp.float32),
        grid=(nB, L),
        in_specs=in_specs,
        out_specs=pl.BlockSpec((bb, 1, H), bmap),
        scratch_shapes=[pltpu.VMEM((bb * S, H), jnp.float32),    # residual stream
                        pltpu.VMEM((bb * S, H), jnp.bfloat16)],  # attention ctx
        compiler_params=pltpu.CompilerParams(
            dimension_semantics=("parallel", "arbitrary"),
            vmem_limit_bytes=vmem_limit),
    )(emb, bias, segw, params["emb_ln_g"], params["emb_ln_b"],
      enc["wq"], enc["bq"], enc["wk"], enc["bk"], enc["wv"], enc["bv"],
      enc["wo"], enc["bo"], enc["ln1_g"], enc["ln1_b"],
      enc["w1"], enc["b1"], enc["w2"], enc["b2"], enc["ln2_g"], enc["ln2_b"])
    return pooled


# ----------------------------- parameter setup -------------------------------
def init_params(key, vocab, max_len, n_seg, H, F, n_layers, num_heads):
    ks = iter(jax.random.split(key, 16 + 8 * n_layers))
    std = 0.02

    def normal(shape):
        return (std * jax.random.normal(next(ks), shape)).astype(jnp.float32)

    def stacked(shape):  # (L,) + shape matmul weights, stored bf16 for the MXU
        return jnp.stack([normal(shape) for _ in range(n_layers)]).astype(jnp.bfloat16)

    def zeros(shape):
        return jnp.zeros((n_layers,) + shape, jnp.float32)

    def ones(shape):
        return jnp.ones((n_layers,) + shape, jnp.float32)

    return {
        "word_emb": normal((vocab, H)),
        "pos_emb": normal((max_len, H)),
        "seg_emb": normal((n_seg, H)),
        "emb_ln_g": jnp.ones((1, H), jnp.float32),
        "emb_ln_b": jnp.zeros((1, H), jnp.float32),
        "enc": {
            "wq": stacked((H, H)), "bq": zeros((1, H)),
            "wk": stacked((H, H)), "bk": zeros((1, H)),
            "wv": stacked((H, H)), "bv": zeros((1, H)),
            "wo": stacked((H, H)), "bo": zeros((1, H)),
            "ln1_g": ones((1, H)), "ln1_b": zeros((1, H)),
            "w1": stacked((H, F)), "b1": zeros((1, F)),
            "w2": stacked((F, H)), "b2": zeros((1, H)),
            "ln2_g": ones((1, H)), "ln2_b": zeros((1, H)),
        },
    }


# ------------------------------ forward (glue) --------------------------------
def feature_extractor_forward(params, src, seg, *, num_heads, block_b=1):
    B, S = src.shape
    # Embedding: word + position + segment.
    # TODO(synk): data-dependent embedding row gathers stay in plain JAX.
    emb = (jnp.take(params["word_emb"], src, axis=0)
           + params["pos_emb"][:S][None, :, :]
           + jnp.take(params["seg_emb"], seg, axis=0)).astype(jnp.float32)

    # Hoisted once for all layers: additive attention bias and pooling weights
    # (raw seg values, matching UER pooling("mean") semantics), both lane-dense.
    bias = jnp.where(seg > 0, 0.0, -10000.0).astype(jnp.float32).reshape(B, 1, S)
    segw = seg.astype(jnp.float32).reshape(B, 1, S)

    pooled = bert_encode_pool(emb, bias, segw, params,
                              num_heads=num_heads, block_b=block_b)
    return pooled[:, 0, :]


# ----------------------------------- main -------------------------------------
if __name__ == "__main__":
    B, S, H, F = 2, 8, 32, 64
    NUM_HEADS, N_LAYERS = 2, 2
    VOCAB, MAX_LEN, N_SEG = 64, 64, 3

    key = jax.random.PRNGKey(0)
    k_param, k_src = jax.random.split(key)

    params = init_params(k_param, VOCAB, MAX_LEN, N_SEG, H, F, N_LAYERS, NUM_HEADS)
    src = jax.random.randint(k_src, (B, S), 0, VOCAB, dtype=jnp.int32)
    seg = jnp.array([[1, 1, 1, 1, 1, 1, 0, 0],
                     [1, 1, 1, 1, 0, 0, 0, 0]], dtype=jnp.int32)

    fwd = jax.jit(functools.partial(feature_extractor_forward, num_heads=NUM_HEADS))
    features = fwd(params, src, seg)
    jax.block_until_ready(features)
    assert features.shape == (B, H) and features.dtype == jnp.float32
    print("KERNEL_OK")
</pallas_src>

<mosaic_0001>
module attributes {stable_mosaic.version = 11 : i64} {
  func.func @bert_layers_kernel(%arg0: i32, %arg1: i32, %arg2: memref<1x8x32xf32, #tpu.memory_space<vmem>>, %arg3: memref<1x1x8xf32, #tpu.memory_space<vmem>>, %arg4: memref<1x1x8xf32, #tpu.memory_space<vmem>>, %arg5: memref<1x32xf32, #tpu.memory_space<vmem>>, %arg6: memref<1x32xf32, #tpu.memory_space<vmem>>, %arg7: memref<1x32x32xbf16, #tpu.memory_space<vmem>>, %arg8: memref<1x1x32xf32, #tpu.memory_space<vmem>>, %arg9: memref<1x32x32xbf16, #tpu.memory_space<vmem>>, %arg10: memref<1x1x32xf32, #tpu.memory_space<vmem>>, %arg11: memref<1x32x32xbf16, #tpu.memory_space<vmem>>, %arg12: memref<1x1x32xf32, #tpu.memory_space<vmem>>, %arg13: memref<1x32x32xbf16, #tpu.memory_space<vmem>>, %arg14: memref<1x1x32xf32, #tpu.memory_space<vmem>>, %arg15: memref<1x1x32xf32, #tpu.memory_space<vmem>>, %arg16: memref<1x1x32xf32, #tpu.memory_space<vmem>>, %arg17: memref<1x32x64xbf16, #tpu.memory_space<vmem>>, %arg18: memref<1x1x64xf32, #tpu.memory_space<vmem>>, %arg19: memref<1x64x32xbf16, #tpu.memory_space<vmem>>, %arg20: memref<1x1x32xf32, #tpu.memory_space<vmem>>, %arg21: memref<1x1x32xf32, #tpu.memory_space<vmem>>, %arg22: memref<1x1x32xf32, #tpu.memory_space<vmem>>, %arg23: memref<1x1x32xf32, #tpu.memory_space<vmem>>, %arg24: memref<8x32xf32, #tpu.memory_space<vmem>>, %arg25: memref<8x32xbf16, #tpu.memory_space<vmem>>) attributes {dimension_semantics = [#tpu.dimension_semantics<parallel>, #tpu.dimension_semantics<arbitrary>], iteration_bounds = array<i64: 2, 2>, scalar_prefetch = 0 : i64, scratch_operands = 2 : i64, tpu.core_type = #tpu.core_type<tc>, window_params = [{transform_indices = @transform_0, window_bounds = array<i64: 1, 8, 32>}, {transform_indices = @transform_1, window_bounds = array<i64: 1, 1, 8>}, {transform_indices = @transform_2, window_bounds = array<i64: 1, 1, 8>}, {pipeline_mode = #tpu.pipeline_mode<synchronous>, transform_indices = @transform_3, window_bounds = array<i64: 1, 32>}, {pipeline_mode = #tpu.pipeline_mode<synchronous>, transform_indices = @transform_4, window_bounds = array<i64: 1, 32>}, {transform_indices = @transform_5, window_bounds = array<i64: 1, 32, 32>}, {transform_indices = @transform_6, window_bounds = array<i64: 1, 1, 32>}, {transform_indices = @transform_7, window_bounds = array<i64: 1, 32, 32>}, {transform_indices = @transform_8, window_bounds = array<i64: 1, 1, 32>}, {transform_indices = @transform_9, window_bounds = array<i64: 1, 32, 32>}, {transform_indices = @transform_10, window_bounds = array<i64: 1, 1, 32>}, {transform_indices = @transform_11, window_bounds = array<i64: 1, 32, 32>}, {transform_indices = @transform_12, window_bounds = array<i64: 1, 1, 32>}, {transform_indices = @transform_13, window_bounds = array<i64: 1, 1, 32>}, {transform_indices = @transform_14, window_bounds = array<i64: 1, 1, 32>}, {transform_indices = @transform_15, window_bounds = array<i64: 1, 32, 64>}, {transform_indices = @transform_16, window_bounds = array<i64: 1, 1, 64>}, {transform_indices = @transform_17, window_bounds = array<i64: 1, 64, 32>}, {transform_indices = @transform_18, window_bounds = array<i64: 1, 1, 32>}, {transform_indices = @transform_19, window_bounds = array<i64: 1, 1, 32>}, {transform_indices = @transform_20, window_bounds = array<i64: 1, 1, 32>}, {transform_indices = @transform_21, window_bounds = array<i64: 1, 1, 32>}]} {
    %c0_i32 = arith.constant 0 : i32
    %0 = arith.cmpi eq, %arg1, %c0_i32 : i32
    %1 = arith.extui %0 : i1 to i32
    %c0_i32_0 = arith.constant 0 : i32
    %2 = arith.cmpi ne, %1, %c0_i32_0 : i32
    scf.if %2 {
      %c0_89 = arith.constant 0 : index
      %c0_90 = arith.constant 0 : index
      %c0_91 = arith.constant 0 : index
      %172 = vector.load %arg2[%c0_89, %c0_90, %c0_91] : memref<1x8x32xf32, #tpu.memory_space<vmem>>, vector<1x8x32xf32>
      %173 = vector.shape_cast %172 : vector<1x8x32xf32> to vector<8x32xf32>
      %c0_92 = arith.constant 0 : index
      %c0_93 = arith.constant 0 : index
      %174 = vector.load %arg5[%c0_92, %c0_93] : memref<1x32xf32, #tpu.memory_space<vmem>>, vector<1x32xf32>
      %c0_94 = arith.constant 0 : index
      %c0_95 = arith.constant 0 : index
      %175 = vector.load %arg6[%c0_94, %c0_95] : memref<1x32xf32, #tpu.memory_space<vmem>>, vector<1x32xf32>
      %cst_96 = arith.constant dense<0.000000e+00> : vector<8xf32>
      %176 = vector.multi_reduction <add>, %173, %cst_96 [1] : vector<8x32xf32> to vector<8xf32>
      %177 = vector.shape_cast %176 : vector<8xf32> to vector<8x1xf32>
      %cst_97 = arith.constant 3.200000e+01 : f32
      %178 = vector.broadcast %cst_97 : f32 to vector<8x1xf32>
      %179 = arith.divf %177, %178 : vector<8x1xf32>
      %180 = vector.broadcast %179 : vector<8x1xf32> to vector<8x32xf32>
      %181 = arith.subf %173, %180 : vector<8x32xf32>
      %182 = arith.mulf %181, %181 : vector<8x32xf32>
      %cst_98 = arith.constant dense<0.000000e+00> : vector<8xf32>
      %183 = vector.multi_reduction <add>, %182, %cst_98 [1] : vector<8x32xf32> to vector<8xf32>
      %184 = vector.shape_cast %183 : vector<8xf32> to vector<8x1xf32>
      %cst_99 = arith.constant 3.200000e+01 : f32
      %185 = vector.broadcast %cst_99 : f32 to vector<8x1xf32>
      %186 = arith.divf %184, %185 : vector<8x1xf32>
      %187 = vector.broadcast %179 : vector<8x1xf32> to vector<8x32xf32>
      %188 = arith.subf %173, %187 : vector<8x32xf32>
      %cst_100 = arith.constant 9.99999997E-7 : f32
      %189 = vector.broadcast %cst_100 : f32 to vector<8x1xf32>
      %190 = arith.addf %186, %189 : vector<8x1xf32>
      %191 = math.rsqrt %190 : vector<8x1xf32>
      %192 = vector.broadcast %191 : vector<8x1xf32> to vector<8x32xf32>
      %193 = arith.mulf %188, %192 : vector<8x32xf32>
      %194 = vector.broadcast %174 : vector<1x32xf32> to vector<8x32xf32>
      %195 = arith.mulf %193, %194 : vector<8x32xf32>
      %196 = vector.broadcast %175 : vector<1x32xf32> to vector<8x32xf32>
      %197 = arith.addf %195, %196 : vector<8x32xf32>
      %c0_101 = arith.constant 0 : index
      %c0_102 = arith.constant 0 : index
      %198 = vector.load %arg24[%c0_101, %c0_102] : memref<8x32xf32, #tpu.memory_space<vmem>>, vector<8x32xf32>
      tpu.vector_store %arg24[%c0_101, %c0_102], %197 {strides = array<i32>} : memref<8x32xf32, #tpu.memory_space<vmem>>, vector<8x32xf32>,
    } else {
    }
    %c0 = arith.constant 0 : index
    %c0_1 = arith.constant 0 : index
    %3 = vector.load %arg24[%c0, %c0_1] : memref<8x32xf32, #tpu.memory_space<vmem>>, vector<8x32xf32>
    %4 = arith.truncf %3 : vector<8x32xf32> to vector<8x32xbf16>
    %c0_2 = arith.constant 0 : index
    %c0_3 = arith.constant 0 : index
    %c0_4 = arith.constant 0 : index
    %5 = vector.load %arg7[%c0_2, %c0_3, %c0_4] : memref<1x32x32xbf16, #tpu.memory_space<vmem>>, vector<1x32x32xbf16>
    %6 = vector.shape_cast %5 : vector<1x32x32xbf16> to vector<32x32xbf16>
    %cst = arith.constant dense<0.000000e+00> : vector<8x32xf32>
    %7 = tpu.matmul %4, %6, %cst {dimension_numbers = #tpu.dot_dimension_numbers<[1], [0], [0], [1], [0, 0, 1, 1], [], []>} : vector<8x32xbf16>, vector<32x32xbf16>, vector<8x32xf32> -> vector<8x32xf32>
    %c0_5 = arith.constant 0 : index
    %c0_6 = arith.constant 0 : index
    %c0_7 = arith.constant 0 : index
    %8 = vector.load %arg8[%c0_5, %c0_6, %c0_7] : memref<1x1x32xf32, #tpu.memory_space<vmem>>, vector<1x1x32xf32>
    %9 = vector.shape_cast %8 : vector<1x1x32xf32> to vector<1x32xf32>
    %10 = vector.broadcast %9 : vector<1x32xf32> to vector<8x32xf32>
    %11 = arith.addf %7, %10 : vector<8x32xf32>
    %cst_8 = arith.constant 2.500000e-01 : f32
    %12 = vector.broadcast %cst_8 : f32 to vector<8x32xf32>
    %13 = arith.mulf %11, %12 : vector<8x32xf32>
    %c0_9 = arith.constant 0 : index
    %c0_10 = arith.constant 0 : index
    %c0_11 = arith.constant 0 : index
    %14 = vector.load %arg9[%c0_9, %c0_10, %c0_11] : memref<1x32x32xbf16, #tpu.memory_space<vmem>>, vector<1x32x32xbf16>
    %15 = vector.shape_cast %14 : vector<1x32x32xbf16> to vector<32x32xbf16>
    %cst_12 = arith.constant dense<0.000000e+00> : vector<8x32xf32>
    %16 = tpu.matmul %4, %15, %cst_12 {dimension_numbers = #tpu.dot_dimension_numbers<[1], [0], [0], [1], [0, 0, 1, 1], [], []>} : vector<8x32xbf16>, vector<32x32xbf16>, vector<8x32xf32> -> vector<8x32xf32>
    %c0_13 = arith.constant 0 : index
    %c0_14 = arith.constant 0 : index
    %c0_15 = arith.constant 0 : index
    %17 = vector.load %arg10[%c0_13, %c0_14, %c0_15] : memref<1x1x32xf32, #tpu.memory_space<vmem>>, vector<1x1x32xf32>
    %18 = vector.shape_cast %17 : vector<1x1x32xf32> to vector<1x32xf32>
    %19 = vector.broadcast %18 : vector<1x32xf32> to vector<8x32xf32>
    %20 = arith.addf %16, %19 : vector<8x32xf32>
    %c0_16 = arith.constant 0 : index
    %c0_17 = arith.constant 0 : index
    %c0_18 = arith.constant 0 : index
    %21 = vector.load %arg11[%c0_16, %c0_17, %c0_18] : memref<1x32x32xbf16, #tpu.memory_space<vmem>>, vector<1x32x32xbf16>
    %22 = vector.shape_cast %21 : vector<1x32x32xbf16> to vector<32x32xbf16>
    %cst_19 = arith.constant dense<0.000000e+00> : vector<8x32xf32>
    %23 = tpu.matmul %4, %22, %cst_19 {dimension_numbers = #tpu.dot_dimension_numbers<[1], [0], [0], [1], [0, 0, 1, 1], [], []>} : vector<8x32xbf16>, vector<32x32xbf16>, vector<8x32xf32> -> vector<8x32xf32>
    %c0_20 = arith.constant 0 : index
    %c0_21 = arith.constant 0 : index
    %c0_22 = arith.constant 0 : index
    %24 = vector.load %arg12[%c0_20, %c0_21, %c0_22] : memref<1x1x32xf32, #tpu.memory_space<vmem>>, vector<1x1x32xf32>
    %25 = vector.shape_cast %24 : vector<1x1x32xf32> to vector<1x32xf32>
    %26 = vector.broadcast %25 : vector<1x32xf32> to vector<8x32xf32>
    %27 = arith.addf %23, %26 : vector<8x32xf32>
    %28 = arith.truncf %13 : vector<8x32xf32> to vector<8x32xbf16>
    %29 = vector.shape_cast %28 : vector<8x32xbf16> to vector<1x8x32xbf16>
    %30 = arith.truncf %20 : vector<8x32xf32> to vector<8x32xbf16>
    %31 = vector.shape_cast %30 : vector<8x32xbf16> to vector<1x8x32xbf16>
    %32 = arith.truncf %27 : vector<8x32xf32> to vector<8x32xbf16>
    %33 = vector.shape_cast %32 : vector<8x32xbf16> to vector<1x8x32xbf16>
    %c0_23 = arith.constant 0 : index
    %c0_24 = arith.constant 0 : index
    %c0_25 = arith.constant 0 : index
    %34 = vector.load %arg3[%c0_23, %c0_24, %c0_25] : memref<1x1x8xf32, #tpu.memory_space<vmem>>, vector<1x1x8xf32>
    %35 = vector.extract_strided_slice %29 {offsets = [0, 0, 0], sizes = [1, 8, 16], strides = [1, 1, 1]} : vector<1x8x32xbf16> to vector<1x8x16xbf16>
    %36 = vector.extract_strided_slice %31 {offsets = [0, 0, 0], sizes = [1, 8, 16], strides = [1, 1, 1]} : vector<1x8x32xbf16> to vector<1x8x16xbf16>
    "tpu.trace_start"() <{level = 10 : i32, message = "bqd,bkd->bqk"}> : () -> ()
    %cst_26 = arith.constant dense<0.000000e+00> : vector<1x8x8xf32>
    %37 = tpu.matmul %35, %36, %cst_26 {dimension_numbers = #tpu.dot_dimension_numbers<[2], [2], [1], [1], [0, 0, 0, 1, 1, 1], [0], [0]>} : vector<1x8x16xbf16>, vector<1x8x16xbf16>, vector<1x8x8xf32> -> vector<1x8x8xf32>
    "tpu.trace_stop"() : () -> ()
    %38 = vector.broadcast %34 : vector<1x1x8xf32> to vector<1x8x8xf32>
    %39 = arith.addf %37, %38 : vector<1x8x8xf32>
    %cst_27 = arith.constant dense<0xFF800000> : vector<1x8xf32>
    %40 = vector.multi_reduction <maximumf>, %39, %cst_27 [2] : vector<1x8x8xf32> to vector<1x8xf32>
    %41 = vector.shape_cast %40 : vector<1x8xf32> to vector<1x8x1xf32>
    %42 = vector.broadcast %41 : vector<1x8x1xf32> to vector<1x8x8xf32>
    %43 = arith.subf %39, %42 : vector<1x8x8xf32>
    %44 = math.exp %43 : vector<1x8x8xf32>
    %cst_28 = arith.constant dense<0.000000e+00> : vector<1x8xf32>
    %45 = vector.multi_reduction <add>, %44, %cst_28 [2] : vector<1x8x8xf32> to vector<1x8xf32>
    %46 = vector.shape_cast %45 : vector<1x8xf32> to vector<1x8x1xf32>
    %47 = tpu.reciprocal %46 {approx = true} : vector<1x8x1xf32> -> vector<1x8x1xf32>
    %48 = vector.broadcast %47 : vector<1x8x1xf32> to vector<1x8x8xf32>
    %49 = arith.mulf %44, %48 : vector<1x8x8xf32>
    %50 = arith.truncf %49 : vector<1x8x8xf32> to vector<1x8x8xbf16>
    %51 = vector.extract_strided_slice %33 {offsets = [0, 0, 0], sizes = [1, 8, 16], strides = [1, 1, 1]} : vector<1x8x32xbf16> to vector<1x8x16xbf16>
    "tpu.trace_start"() <{level = 10 : i32, message = "bqk,bkd->bqd"}> : () -> ()
    %cst_29 = arith.constant dense<0.000000e+00> : vector<1x8x16xf32>
    %52 = tpu.matmul %50, %51, %cst_29 {dimension_numbers = #tpu.dot_dimension_numbers<[2], [1], [1], [2], [0, 0, 0, 1, 1, 2], [0], [0]>} : vector<1x8x8xbf16>, vector<1x8x16xbf16>, vector<1x8x16xf32> -> vector<1x8x16xf32>
    "tpu.trace_stop"() : () -> ()
    %53 = vector.shape_cast %52 : vector<1x8x16xf32> to vector<8x16xf32>
    %54 = arith.truncf %53 : vector<8x16xf32> to vector<8x16xbf16>
    %c0_30 = arith.constant 0 : index
    %c0_31 = arith.constant 0 : index
    %55 = vector.load %arg25[%c0_30, %c0_31] : memref<8x32xbf16, #tpu.memory_space<vmem>>, vector<8x16xbf16>
    tpu.vector_store %arg25[%c0_30, %c0_31], %54 {strides = array<i32>} : memref<8x32xbf16, #tpu.memory_space<vmem>>, vector<8x16xbf16>,
    %56 = vector.extract_strided_slice %29 {offsets = [0, 0, 16], sizes = [1, 8, 16], strides = [1, 1, 1]} : vector<1x8x32xbf16> to vector<1x8x16xbf16>
    %57 = vector.extract_strided_slice %31 {offsets = [0, 0, 16], sizes = [1, 8, 16], strides = [1, 1, 1]} : vector<1x8x32xbf16> to vector<1x8x16xbf16>
    "tpu.trace_start"() <{level = 10 : i32, message = "bqd,bkd->bqk"}> : () -> ()
    %cst_32 = arith.constant dense<0.000000e+00> : vector<1x8x8xf32>
    %58 = tpu.matmul %56, %57, %cst_32 {dimension_numbers = #tpu.dot_dimension_numbers<[2], [2], [1], [1], [0, 0, 0, 1, 1, 1], [0], [0]>} : vector<1x8x16xbf16>, vector<1x8x16xbf16>, vector<1x8x8xf32> -> vector<1x8x8xf32>
    "tpu.trace_stop"() : () -> ()
    %59 = vector.broadcast %34 : vector<1x1x8xf32> to vector<1x8x8xf32>
    %60 = arith.addf %58, %59 : vector<1x8x8xf32>
    %cst_33 = arith.constant dense<0xFF800000> : vector<1x8xf32>
    %61 = vector.multi_reduction <maximumf>, %60, %cst_33 [2] : vector<1x8x8xf32> to vector<1x8xf32>
    %62 = vector.shape_cast %61 : vector<1x8xf32> to vector<1x8x1xf32>
    %63 = vector.broadcast %62 : vector<1x8x1xf32> to vector<1x8x8xf32>
    %64 = arith.subf %60, %63 : vector<1x8x8xf32>
    %65 = math.exp %64 : vector<1x8x8xf32>
    %cst_34 = arith.constant dense<0.000000e+00> : vector<1x8xf32>
    %66 = vector.multi_reduction <add>, %65, %cst_34 [2] : vector<1x8x8xf32> to vector<1x8xf32>
    %67 = vector.shape_cast %66 : vector<1x8xf32> to vector<1x8x1xf32>
    %68 = tpu.reciprocal %67 {approx = true} : vector<1x8x1xf32> -> vector<1x8x1xf32>
    %69 = vector.broadcast %68 : vector<1x8x1xf32> to vector<1x8x8xf32>
    %70 = arith.mulf %65, %69 : vector<1x8x8xf32>
    %71 = arith.truncf %70 : vector<1x8x8xf32> to vector<1x8x8xbf16>
    %72 = vector.extract_strided_slice %33 {offsets = [0, 0, 16], sizes = [1, 8, 16], strides = [1, 1, 1]} : vector<1x8x32xbf16> to vector<1x8x16xbf16>
    "tpu.trace_start"() <{level = 10 : i32, message = "bqk,bkd->bqd"}> : () -> ()
    %cst_35 = arith.constant dense<0.000000e+00> : vector<1x8x16xf32>
    %73 = tpu.matmul %71, %72, %cst_35 {dimension_numbers = #tpu.dot_dimension_numbers<[2], [1], [1], [2], [0, 0, 0, 1, 1, 2], [0], [0]>} : vector<1x8x8xbf16>, vector<1x8x16xbf16>, vector<1x8x16xf32> -> vector<1x8x16xf32>
    "tpu.trace_stop"() : () -> ()
    %74 = vector.shape_cast %73 : vector<1x8x16xf32> to vector<8x16xf32>
    %75 = arith.truncf %74 : vector<8x16xf32> to vector<8x16xbf16>
    %c0_36 = arith.constant 0 : index
    %c16 = arith.constant 16 : index
    %76 = vector.load %arg25[%c0_36, %c16] : memref<8x32xbf16, #tpu.memory_space<vmem>>, vector<8x16xbf16>
    tpu.vector_store %arg25[%c0_36, %c16], %75 {strides = array<i32>} : memref<8x32xbf16, #tpu.memory_space<vmem>>, vector<8x16xbf16>,
    %c0_37 = arith.constant 0 : index
    %c0_38 = arith.constant 0 : index
    %77 = vector.load %arg25[%c0_37, %c0_38] : memref<8x32xbf16, #tpu.memory_space<vmem>>, vector<8x32xbf16>
    %c0_39 = arith.constant 0 : index
    %c0_40 = arith.constant 0 : index
    %c0_41 = arith.constant 0 : index
    %78 = vector.load %arg13[%c0_39, %c0_40, %c0_41] : memref<1x32x32xbf16, #tpu.memory_space<vmem>>, vector<1x32x32xbf16>
    %79 = vector.shape_cast %78 : vector<1x32x32xbf16> to vector<32x32xbf16>
    %cst_42 = arith.constant dense<0.000000e+00> : vector<8x32xf32>
    %80 = tpu.matmul %77, %79, %cst_42 {dimension_numbers = #tpu.dot_dimension_numbers<[1], [0], [0], [1], [0, 0, 1, 1], [], []>} : vector<8x32xbf16>, vector<32x32xbf16>, vector<8x32xf32> -> vector<8x32xf32>
    %c0_43 = arith.constant 0 : index
    %c0_44 = arith.constant 0 : index
    %c0_45 = arith.constant 0 : index
    %81 = vector.load %arg14[%c0_43, %c0_44, %c0_45] : memref<1x1x32xf32, #tpu.memory_space<vmem>>, vector<1x1x32xf32>
    %82 = vector.shape_cast %81 : vector<1x1x32xf32> to vector<1x32xf32>
    %83 = vector.broadcast %82 : vector<1x32xf32> to vector<8x32xf32>
    %84 = arith.addf %80, %83 : vector<8x32xf32>
    %85 = arith.addf %3, %84 : vector<8x32xf32>
    %c0_46 = arith.constant 0 : index
    %c0_47 = arith.constant 0 : index
    %c0_48 = arith.constant 0 : index
    %86 = vector.load %arg15[%c0_46, %c0_47, %c0_48] : memref<1x1x32xf32, #tpu.memory_space<vmem>>, vector<1x1x32xf32>
    %87 = vector.shape_cast %86 : vector<1x1x32xf32> to vector<1x32xf32>
    %c0_49 = arith.constant 0 : index
    %c0_50 = arith.constant 0 : index
    %c0_51 = arith.constant 0 : index
    %88 = vector.load %arg16[%c0_49, %c0_50, %c0_51] : memref<1x1x32xf32, #tpu.memory_space<vmem>>, vector<1x1x32xf32>
    %89 = vector.shape_cast %88 : vector<1x1x32xf32> to vector<1x32xf32>
    %cst_52 = arith.constant dense<0.000000e+00> : vector<8xf32>
    %90 = vector.multi_reduction <add>, %85, %cst_52 [1] : vector<8x32xf32> to vector<8xf32>
    %91 = vector.shape_cast %90 : vector<8xf32> to vector<8x1xf32>
    %cst_53 = arith.constant 3.200000e+01 : f32
    %92 = vector.broadcast %cst_53 : f32 to vector<8x1xf32>
    %93 = arith.divf %91, %92 : vector<8x1xf32>
    %94 = vector.broadcast %93 : vector<8x1xf32> to vector<8x32xf32>
    %95 = arith.subf %85, %94 : vector<8x32xf32>
    %96 = arith.mulf %95, %95 : vector<8x32xf32>
    %cst_54 = arith.constant dense<0.000000e+00> : vector<8xf32>
    %97 = vector.multi_reduction <add>, %96, %cst_54 [1] : vector<8x32xf32> to vector<8xf32>
    %98 = vector.shape_cast %97 : vector<8xf32> to vector<8x1xf32>
    %cst_55 = arith.constant 3.200000e+01 : f32
    %99 = vector.broadcast %cst_55 : f32 to vector<8x1xf32>
    %100 = arith.divf %98, %99 : vector<8x1xf32>
    %101 = vector.broadcast %93 : vector<8x1xf32> to vector<8x32xf32>
    %102 = arith.subf %85, %101 : vector<8x32xf32>
    %cst_56 = arith.constant 9.99999997E-7 : f32
    %103 = vector.broadcast %cst_56 : f32 to vector<8x1xf32>
    %104 = arith.addf %100, %103 : vector<8x1xf32>
    %105 = math.rsqrt %104 : vector<8x1xf32>
    %106 = vector.broadcast %105 : vector<8x1xf32> to vector<8x32xf32>
    %107 = arith.mulf %102, %106 : vector<8x32xf32>
    %108 = vector.broadcast %87 : vector<1x32xf32> to vector<8x32xf32>
    %109 = arith.mulf %107, %108 : vector<8x32xf32>
    %110 = vector.broadcast %89 : vector<1x32xf32> to vector<8x32xf32>
    %111 = arith.addf %109, %110 : vector<8x32xf32>
    %112 = arith.truncf %111 : vector<8x32xf32> to vector<8x32xbf16>
    %c0_57 = arith.constant 0 : index
    %c0_58 = arith.constant 0 : index
    %c0_59 = arith.constant 0 : index
    %113 = vector.load %arg17[%c0_57, %c0_58, %c0_59] : memref<1x32x64xbf16, #tpu.memory_space<vmem>>, vector<1x32x64xbf16>
    %114 = vector.shape_cast %113 : vector<1x32x64xbf16> to vector<32x64xbf16>
    %cst_60 = arith.constant dense<0.000000e+00> : vector<8x64xf32>
    %115 = tpu.matmul %112, %114, %cst_60 {dimension_numbers = #tpu.dot_dimension_numbers<[1], [0], [0], [1], [0, 0, 1, 1], [], []>} : vector<8x32xbf16>, vector<32x64xbf16>, vector<8x64xf32> -> vector<8x64xf32>
    %c0_61 = arith.constant 0 : index
    %c0_62 = arith.constant 0 : index
    %c0_63 = arith.constant 0 : index
    %116 = vector.load %arg18[%c0_61, %c0_62, %c0_63] : memref<1x1x64xf32, #tpu.memory_space<vmem>>, vector<1x1x64xf32>
    %117 = vector.shape_cast %116 : vector<1x1x64xf32> to vector<1x64xf32>
    %118 = vector.broadcast %117 : vector<1x64xf32> to vector<8x64xf32>
    %119 = arith.addf %115, %118 : vector<8x64xf32>
    %cst_64 = arith.constant 5.000000e-01 : f32
    %120 = vector.broadcast %cst_64 : f32 to vector<8x64xf32>
    %121 = arith.mulf %120, %119 : vector<8x64xf32>
    %cst_65 = arith.constant 4.471500e-02 : f32
    %122 = vector.broadcast %cst_65 : f32 to vector<8x64xf32>
    %123 = arith.mulf %122, %119 : vector<8x64xf32>
    %124 = arith.mulf %123, %119 : vector<8x64xf32>
    %125 = arith.mulf %124, %119 : vector<8x64xf32>
    %126 = arith.addf %119, %125 : vector<8x64xf32>
    %cst_66 = arith.constant 0.797884583 : f32
    %127 = vector.broadcast %cst_66 : f32 to vector<8x64xf32>
    %128 = arith.mulf %127, %126 : vector<8x64xf32>
    %129 = math.tanh %128 : vector<8x64xf32>
    %cst_67 = arith.constant 1.000000e+00 : f32
    %130 = vector.broadcast %cst_67 : f32 to vector<8x64xf32>
    %131 = arith.addf %130, %129 : vector<8x64xf32>
    %132 = arith.mulf %121, %131 : vector<8x64xf32>
    %133 = arith.truncf %132 : vector<8x64xf32> to vector<8x64xbf16>
    %c0_68 = arith.constant 0 : index
    %c0_69 = arith.constant 0 : index
    %c0_70 = arith.constant 0 : index
    %134 = vector.load %arg19[%c0_68, %c0_69, %c0_70] : memref<1x64x32xbf16, #tpu.memory_space<vmem>>, vector<1x64x32xbf16>
    %135 = vector.shape_cast %134 : vector<1x64x32xbf16> to vector<64x32xbf16>
    %cst_71 = arith.constant dense<0.000000e+00> : vector<8x32xf32>
    %136 = tpu.matmul %133, %135, %cst_71 {dimension_numbers = #tpu.dot_dimension_numbers<[1], [0], [0], [1], [0, 0, 1, 1], [], []>} : vector<8x64xbf16>, vector<64x32xbf16>, vector<8x32xf32> -> vector<8x32xf32>
    %c0_72 = arith.constant 0 : index
    %c0_73 = arith.constant 0 : index
    %c0_74 = arith.constant 0 : index
    %137 = vector.load %arg20[%c0_72, %c0_73, %c0_74] : memref<1x1x32xf32, #tpu.memory_space<vmem>>, vector<1x1x32xf32>
    %138 = vector.shape_cast %137 : vector<1x1x32xf32> to vector<1x32xf32>
    %139 = vector.broadcast %138 : vector<1x32xf32> to vector<8x32xf32>
    %140 = arith.addf %136, %139 : vector<8x32xf32>
    %141 = arith.addf %111, %140 : vector<8x32xf32>
    %c0_75 = arith.constant 0 : index
    %c0_76 = arith.constant 0 : index
    %c0_77 = arith.constant 0 : index
    %142 = vector.load %arg21[%c0_75, %c0_76, %c0_77] : memref<1x1x32xf32, #tpu.memory_space<vmem>>, vector<1x1x32xf32>
    %143 = vector.shape_cast %142 : vector<1x1x32xf32> to vector<1x32xf32>
    %c0_78 = arith.constant 0 : index
    %c0_79 = arith.constant 0 : index
    %c0_80 = arith.constant 0 : index
    %144 = vector.load %arg22[%c0_78, %c0_79, %c0_80] : memref<1x1x32xf32, #tpu.memory_space<vmem>>, vector<1x1x32xf32>
    %145 = vector.shape_cast %144 : vector<1x1x32xf32> to vector<1x32xf32>
    %cst_81 = arith.constant dense<0.000000e+00> : vector<8xf32>
    %146 = vector.multi_reduction <add>, %141, %cst_81 [1] : vector<8x32xf32> to vector<8xf32>
    %147 = vector.shape_cast %146 : vector<8xf32> to vector<8x1xf32>
    %cst_82 = arith.constant 3.200000e+01 : f32
    %148 = vector.broadcast %cst_82 : f32 to vector<8x1xf32>
    %149 = arith.divf %147, %148 : vector<8x1xf32>
    %150 = vector.broadcast %149 : vector<8x1xf32> to vector<8x32xf32>
    %151 = arith.subf %141, %150 : vector<8x32xf32>
    %152 = arith.mulf %151, %151 : vector<8x32xf32>
    %cst_83 = arith.constant dense<0.000000e+00> : vector<8xf32>
    %153 = vector.multi_reduction <add>, %152, %cst_83 [1] : vector<8x32xf32> to vector<8xf32>
    %154 = vector.shape_cast %153 : vector<8xf32> to vector<8x1xf32>
    %cst_84 = arith.constant 3.200000e+01 : f32
    %155 = vector.broadcast %cst_84 : f32 to vector<8x1xf32>
    %156 = arith.divf %154, %155 : vector<8x1xf32>
    %157 = vector.broadcast %149 : vector<8x1xf32> to vector<8x32xf32>
    %158 = arith.subf %141, %157 : vector<8x32xf32>
    %cst_85 = arith.constant 9.99999997E-7 : f32
    %159 = vector.broadcast %cst_85 : f32 to vector<8x1xf32>
    %160 = arith.addf %156, %159 : vector<8x1xf32>
    %161 = math.rsqrt %160 : vector<8x1xf32>
    %162 = vector.broadcast %161 : vector<8x1xf32> to vector<8x32xf32>
    %163 = arith.mulf %158, %162 : vector<8x32xf32>
    %164 = vector.broadcast %143 : vector<1x32xf32> to vector<8x32xf32>
    %165 = arith.mulf %163, %164 : vector<8x32xf32>
    %166 = vector.broadcast %145 : vector<1x32xf32> to vector<8x32xf32>
    %167 = arith.addf %165, %166 : vector<8x32xf32>
    %c0_86 = arith.constant 0 : index
    %c0_87 = arith.constant 0 : index
    %168 = vector.load %arg24[%c0_86, %c0_87] : memref<8x32xf32, #tpu.memory_space<vmem>>, vector<8x32xf32>
    tpu.vector_store %arg24[%c0_86, %c0_87], %167 {strides = array<i32>} : memref<8x32xf32, #tpu.memory_space<vmem>>, vector<8x32xf32>,
    %c1_i32 = arith.constant 1 : i32
    %169 = arith.cmpi eq, %arg1, %c1_i32 : i32
    %170 = arith.extui %169 : i1 to i32
    %c0_i32_88 = arith.constant 0 : i32
    %171 = arith.cmpi ne, %170, %c0_i32_88 : i32
    scf.if %171 {
      %c0_89 = arith.constant 0 : index
      %c0_90 = arith.constant 0 : index
      %c0_91 = arith.constant 0 : index
      %172 = vector.load %arg4[%c0_89, %c0_90, %c0_91] : memref<1x1x8xf32, #tpu.memory_space<vmem>>, vector<1x1x8xf32>
      %173 = vector.shape_cast %167 : vector<8x32xf32> to vector<1x8x32xf32>
      "tpu.trace_start"() <{level = 10 : i32, message = "bxs,bsh->bxh"}> : () -> ()
      %cst_92 = arith.constant dense<0.000000e+00> : vector<1x1x32xf32>
      %174 = tpu.matmul %172, %173, %cst_92 {dimension_numbers = #tpu.dot_dimension_numbers<[2], [1], [1], [2], [0, 0, 0, 1, 1, 2], [0], [0]>} : vector<1x1x8xf32>, vector<1x8x32xf32>, vector<1x1x32xf32> -> vector<1x1x32xf32>
      "tpu.trace_stop"() : () -> ()
      %cst_93 = arith.constant dense<0.000000e+00> : vector<1x1xf32>
      %175 = vector.multi_reduction <add>, %172, %cst_93 [2] : vector<1x1x8xf32> to vector<1x1xf32>
      %176 = vector.shape_cast %175 : vector<1x1xf32> to vector<1x1x1xf32>
      %cst_94 = arith.constant 9.99999997E-7 : f32
      %177 = vector.broadcast %cst_94 : f32 to vector<1x1x1xf32>
      %178 = arith.maximumf %176, %177 : vector<1x1x1xf32>
      %179 = vector.broadcast %178 : vector<1x1x1xf32> to vector<1x1x32xf32>
      %180 = arith.divf %174, %179 : vector<1x1x32xf32>
      %c0_95 = arith.constant 0 : index
      %c0_96 = arith.constant 0 : index
      %c0_97 = arith.constant 0 : index
      %181 = vector.load %arg23[%c0_95, %c0_96, %c0_97] : memref<1x1x32xf32, #tpu.memory_space<vmem>>, vector<1x1x32xf32>
      tpu.vector_store %arg23[%c0_95, %c0_96, %c0_97], %180 {strides = array<i32>} : memref<1x1x32xf32, #tpu.memory_space<vmem>>, vector<1x1x32xf32>,
    } else {
    }
    return
  }
  func.func @transform_0(%arg0: i32, %arg1: i32) -> (i32, i32, i32) {
    %c0_i32 = arith.constant 0 : i32
    %c0_i32_0 = arith.constant 0 : i32
    %c0_i32_1 = arith.constant 0 : i32
    return %arg0, %c0_i32, %c0_i32_0 : i32, i32, i32
  }
  func.func @transform_1(%arg0: i32, %arg1: i32) -> (i32, i32, i32) {
    %c0_i32 = arith.constant 0 : i32
    %c0_i32_0 = arith.constant 0 : i32
    %c0_i32_1 = arith.constant 0 : i32
    return %arg0, %c0_i32, %c0_i32_0 : i32, i32, i32
  }
  func.func @transform_2(%arg0: i32, %arg1: i32) -> (i32, i32, i32) {
    %c0_i32 = arith.constant 0 : i32
    %c0_i32_0 = arith.constant 0 : i32
    %c0_i32_1 = arith.constant 0 : i32
    return %arg0, %c0_i32, %c0_i32_0 : i32, i32, i32
  }
  func.func @transform_3(%arg0: i32, %arg1: i32) -> (i32, i32) {
    %c0_i32 = arith.constant 0 : i32
    %c0_i32_0 = arith.constant 0 : i32
    %c0_i32_1 = arith.constant 0 : i32
    return %c0_i32, %c0_i32_0 : i32, i32
  }
  func.func @transform_4(%arg0: i32, %arg1: i32) -> (i32, i32) {
    %c0_i32 = arith.constant 0 : i32
    %c0_i32_0 = arith.constant 0 : i32
    %c0_i32_1 = arith.constant 0 : i32
    return %c0_i32, %c0_i32_0 : i32, i32
  }
  func.func @transform_5(%arg0: i32, %arg1: i32) -> (i32, i32, i32) {
    %c0_i32 = arith.constant 0 : i32
    %c0_i32_0 = arith.constant 0 : i32
    %c0_i32_1 = arith.constant 0 : i32
    return %arg1, %c0_i32, %c0_i32_0 : i32, i32, i32
  }
  func.func @transform_6(%arg0: i32, %arg1: i32) -> (i32, i32, i32) {
    %c0_i32 = arith.constant 0 : i32
    %c0_i32_0 = arith.constant 0 : i32
    %c0_i32_1 = arith.constant 0 : i32
    return %arg1, %c0_i32, %c0_i32_0 : i32, i32, i32
  }
  func.func @transform_7(%arg0: i32, %arg1: i32) -> (i32, i32, i32) {
    %c0_i32 = arith.constant 0 : i32
    %c0_i32_0 = arith.constant 0 : i32
    %c0_i32_1 = arith.constant 0 : i32
    return %arg1, %c0_i32, %c0_i32_0 : i32, i32, i32
  }
  func.func @transform_8(%arg0: i32, %arg1: i32) -> (i32, i32, i32) {
    %c0_i32 = arith.constant 0 : i32
    %c0_i32_0 = arith.constant 0 : i32
    %c0_i32_1 = arith.constant 0 : i32
    return %arg1, %c0_i32, %c0_i32_0 : i32, i32, i32
  }
  func.func @transform_9(%arg0: i32, %arg1: i32) -> (i32, i32, i32) {
    %c0_i32 = arith.constant 0 : i32
    %c0_i32_0 = arith.constant 0 : i32
    %c0_i32_1 = arith.constant 0 : i32
    return %arg1, %c0_i32, %c0_i32_0 : i32, i32, i32
  }
  func.func @transform_10(%arg0: i32, %arg1: i32) -> (i32, i32, i32) {
    %c0_i32 = arith.constant 0 : i32
    %c0_i32_0 = arith.constant 0 : i32
    %c0_i32_1 = arith.constant 0 : i32
    return %arg1, %c0_i32, %c0_i32_0 : i32, i32, i32
  }
  func.func @transform_11(%arg0: i32, %arg1: i32) -> (i32, i32, i32) {
    %c0_i32 = arith.constant 0 : i32
    %c0_i32_0 = arith.constant 0 : i32
    %c0_i32_1 = arith.constant 0 : i32
    return %arg1, %c0_i32, %c0_i32_0 : i32, i32, i32
  }
  func.func @transform_12(%arg0: i32, %arg1: i32) -> (i32, i32, i32) {
    %c0_i32 = arith.constant 0 : i32
    %c0_i32_0 = arith.constant 0 : i32
    %c0_i32_1 = arith.constant 0 : i32
    return %arg1, %c0_i32, %c0_i32_0 : i32, i32, i32
  }
  func.func @transform_13(%arg0: i32, %arg1: i32) -> (i32, i32, i32) {
    %c0_i32 = arith.constant 0 : i32
    %c0_i32_0 = arith.constant 0 : i32
    %c0_i32_1 = arith.constant 0 : i32
    return %arg1, %c0_i32, %c0_i32_0 : i32, i32, i32
  }
  func.func @transform_14(%arg0: i32, %arg1: i32) -> (i32, i32, i32) {
    %c0_i32 = arith.constant 0 : i32
    %c0_i32_0 = arith.constant 0 : i32
    %c0_i32_1 = arith.constant 0 : i32
    return %arg1, %c0_i32, %c0_i32_0 : i32, i32, i32
  }
  func.func @transform_15(%arg0: i32, %arg1: i32) -> (i32, i32, i32) {
    %c0_i32 = arith.constant 0 : i32
    %c0_i32_0 = arith.constant 0 : i32
    %c0_i32_1 = arith.constant 0 : i32
    return %arg1, %c0_i32, %c0_i32_0 : i32, i32, i32
  }
  func.func @transform_16(%arg0: i32, %arg1: i32) -> (i32, i32, i32) {
    %c0_i32 = arith.constant 0 : i32
    %c0_i32_0 = arith.constant 0 : i32
    %c0_i32_1 = arith.constant 0 : i32
    return %arg1, %c0_i32, %c0_i32_0 : i32, i32, i32
  }
  func.func @transform_17(%arg0: i32, %arg1: i32) -> (i32, i32, i32) {
    %c0_i32 = arith.constant 0 : i32
    %c0_i32_0 = arith.constant 0 : i32
    %c0_i32_1 = arith.constant 0 : i32
    return %arg1, %c0_i32, %c0_i32_0 : i32, i32, i32
  }
  func.func @transform_18(%arg0: i32, %arg1: i32) -> (i32, i32, i32) {
    %c0_i32 = arith.constant 0 : i32
    %c0_i32_0 = arith.constant 0 : i32
    %c0_i32_1 = arith.constant 0 : i32
    return %arg1, %c0_i32, %c0_i32_0 : i32, i32, i32
  }
  func.func @transform_19(%arg0: i32, %arg1: i32) -> (i32, i32, i32) {
    %c0_i32 = arith.constant 0 : i32
    %c0_i32_0 = arith.constant 0 : i32
    %c0_i32_1 = arith.constant 0 : i32
    return %arg1, %c0_i32, %c0_i32_0 : i32, i32, i32
  }
  func.func @transform_20(%arg0: i32, %arg1: i32) -> (i32, i32, i32) {
    %c0_i32 = arith.constant 0 : i32
    %c0_i32_0 = arith.constant 0 : i32
    %c0_i32_1 = arith.constant 0 : i32
    return %arg1, %c0_i32, %c0_i32_0 : i32, i32, i32
  }
  func.func @transform_21(%arg0: i32, %arg1: i32) -> (i32, i32, i32) {
    %c0_i32 = arith.constant 0 : i32
    %c0_i32_0 = arith.constant 0 : i32
    %c0_i32_1 = arith.constant 0 : i32
    return %arg0, %c0_i32, %c0_i32_0 : i32, i32, i32
  }
}

</mosaic_0001>

<bundles_post_ra>
// kernel: feature_extractor_forward.1
= control target key start
LH: loop header
LB: loop body
LE: loop exit
PB: predicated region body
PF: predicated region fallthrough
CT: control target
= control target key end

     0   :  { %s2930_s0 = inlined_call_operand.vmem [shape: f32[2,8,32], index: 0, kind: input, shape index: {}]   ;;  %s2931_s1 = inlined_call_operand.vmem [shape: f32[2,1,8], index: 1, kind: input, shape index: {}]   ;;  %s2932_s2 = inlined_call_operand.vmem [shape: f32[2,1,8], index: 2, kind: input, shape index: {}]   ;;  %s2933_s3 = inlined_call_operand.vmem [shape: f32[1,32], index: 3, kind: input, shape index: {}]   ;;  %s2934_s4 = inlined_call_operand.vmem [shape: f32[1,32], index: 4, kind: input, shape index: {}]   ;;  %s2935_s5 = inlined_call_operand.vmem [shape: bf16[2,32,32], index: 5, kind: input, shape index: {}]   ;;  %s2936_s6 = inlined_call_operand.vmem [shape: f32[2,1,32], index: 6, kind: input, shape index: {}]   ;;  %s2937_s7 = inlined_call_operand.vmem [shape: bf16[2,32,32], index: 7, kind: input, shape index: {}]   ;;  %s2938_s8 = inlined_call_operand.vmem [shape: f32[2,1,32], index: 8, kind: input, shape index: {}]   ;;  %s2939_s9 = inlined_call_operand.vmem [shape: bf16[2,32,32], index: 9, kind: input, shape index: {}]   ;;  %s2940_s10 = inlined_call_operand.vmem [shape: f32[2,1,32], index: 10, kind: input, shape index: {}]   ;;  %s2941_s11 = inlined_call_operand.vmem [shape: bf16[2,32,32], index: 11, kind: input, shape index: {}]   ;;  %s2942_s12 = inlined_call_operand.vmem [shape: f32[2,1,32], index: 12, kind: input, shape index: {}]   ;;  %s2943_s13 = inlined_call_operand.vmem [shape: f32[2,1,32], index: 13, kind: input, shape index: {}]   ;;  %s2944_s14 = inlined_call_operand.vmem [shape: f32[2,1,32], index: 14, kind: input, shape index: {}]   ;;  %s2945_s15 = inlined_call_operand.vmem [shape: bf16[2,32,64], index: 15, kind: input, shape index: {}]   ;;  %s2946_s16 = inlined_call_operand.vmem [shape: f32[2,1,64], index: 16, kind: input, shape index: {}]   ;;  %s2947_s17 = inlined_call_operand.vmem [shape: bf16[2,64,32], index: 17, kind: input, shape index: {}]   ;;  %s2948_s18 = inlined_call_operand.vmem [shape: f32[2,1,32], index: 18, kind: input, shape index: {}]   ;;  %s2949_s19 = inlined_call_operand.vmem [shape: f32[2,1,32], index: 19, kind: input, shape index: {}]   ;;  %s2950_s20 = inlined_call_operand.vmem [shape: f32[2,1,32], index: 20, kind: input, shape index: {}]   ;;  %s2951_s21 = inlined_call_operand.hbm [shape: f32[2,1,32], index: 21, kind: output, shape index: {}]  }
   0x1   :  { %2967 = sst [smem:[#allocation21_spill]] %s2930_s0 }
   0x2   :  { %2968 = sst [smem:[#allocation22_spill]] %s2931_s1 }
   0x3   :  { %2969 = sst [smem:[#allocation23_spill]] %s2932_s2 }
   0x4   :  { %2970 = sst [smem:[#allocation24_spill]] %s2933_s3 }
   0x5   :  { %2971 = sst [smem:[#allocation25_spill]] %s2934_s4 }
   0x6   :  { %2972 = sst [smem:[#allocation26_spill]] %s2935_s5 }
   0x7   :  { %2973 = sst [smem:[#allocation27_spill]] %s2937_s7 }
   0x8   :  { %2974 = sst [smem:[#allocation28_spill]] %s2939_s9 }
   0x9   :  { %2975 = sst [smem:[#allocation29_spill]] %s2941_s11 }
   0xa   :  { %2976 = sst [smem:[#allocation30_spill]] %s2942_s12 }
   0xb   :  { %2977 = sst [smem:[#allocation31_spill]] %s2943_s13 }
   0xc   :  { %2978 = sst [smem:[#allocation32_spill]] %s2944_s14 }
   0xd   :  { %2979 = sst [smem:[#allocation33_spill]] %s2945_s15 }
   0xe   :  { %2980 = sst [smem:[#allocation34_spill]] %s2946_s16 }
   0xf   :  { %2981 = sst [smem:[#allocation35_spill]] %s2947_s17 }
  0x10   :  { %2982 = sst [smem:[#allocation36_spill]] %s2948_s18 }
  0x11   :  { %2983 = sst [smem:[#allocation37_spill]] %s2949_s19 }
  0x12   :  { %2984 = sst [smem:[#allocation38_spill]] %s2950_s20 }
  0x13   :  { %2985 = sst [smem:[#allocation39_spill]] %s2951_s21 }
  0x14   :  { %26 = vsyncpa [#allocation5], 0 }
  0x15   :  { %28 = vsyncpa [#allocation5 + $0x1], 0  ;;  %s2562_s2 = smov 0   ;;  %s2564_s25 = smov 0  }
  0x16   :  { %s2566_s26 = smov 0   ;;  %s2568_s27 = smov 0  }
  0x17   :  { %s2570_s3 = smov 0   ;;  %s2572_s28 = smov 0  }
  0x18   :  { %s2574_s29 = smov 0   ;;  %s2576_s0 = smov 0  }
  0x19 LB: > { %2986 = sst [smem:[#allocation7_spill]] %s2415_s2  ;;  %s2062_s4 = sadd.s32 4294967295, %s2443_s0   ;;  %s2443_s0 = sphi %s2576_s0, %s34_s0   ;;  %s2439_s29 = sphi %s2574_s29, %s3055_s29   ;;  %s2435_s28 = sphi %s2572_s28, %s3054_s28   ;;  %s2431_s3 = sphi %s2570_s3, %s3053_s3   ;;  %s2427_s27 = sphi %s2568_s27, %s3052_s27   ;;  %s2423_s26 = sphi %s2566_s26, %s3051_s26   ;;  %s2419_s25 = sphi %s2564_s25, %s3057_s25   ;;  %s2415_s2 = sphi %s2562_s2, %s3056_s2  }
  0x1a   : > { %2987 = sst [smem:[#allocation8_spill]] %s2423_s26  ;;  %s2063_s30 = sadd.s32 4294967294, %s2443_s0  }
  0x1b   : > { %2988 = sst [smem:[#allocation9_spill]] %s2427_s27  ;;  %s43_s5 = sadd.s32 1, %s2435_s28 }
  0x1c   : > { %2989 = sst [smem:[#allocation10_spill]] %s2431_s3  ;;  %p44_p0 = scmp.ge.s32.totalorder %s43_s5, 2 }
  0x1d   : > { %2990 = sst [smem:[#allocation11_spill]] %s2435_s28  ;;  %s46_s22 = sadd.s32 1, %s2439_s29 }
  0x1e   : > { %2991 = sst [smem:[#allocation12_spill]] %s2439_s29  ;;  %p599_p1 = scmp.ne.s32.totalorder %s2423_s26, %s2419_s25 }
  0x1f   : > { %2992 = sst [smem:[#allocation13_spill]] %s2443_s0  ;;  %p600_p2 = scmp.eq.s32.totalorder %s2062_s4, 3 }
  0x20   : > { %s3059_s5 = smov (%p44_p0, %s43_s5), 0  ;;  %s3061_s22 = smov (!%p44_p0, %s46_s22), %s2439_s29 }
  0x21   : > { %2993 = sst [smem:[#allocation14_spill]] %s3059_s5  ;;  %p2611_p3 = por %p600_p2, %p599_p1 }
  0x22   : > { %p605_p4 = scmp.ne.s32.totalorder %s2419_s25, %s2415_s2  ;;  %p48_p5 = scmp.ge.s32.totalorder %s3061_s22, 2 }
  0x23   : > { %s2994_s23 = scalar_select %p2611_p3, 1, 0 }
  0x24   : > { %p606_p6 = scmp.eq.s32.totalorder %s2063_s30, 3  ;;  %p2066_p7 = scmp.ge.s32.totalorder %s2443_s0, 1 }
  0x25   : > { %2995 = sst [smem:[#allocation15_spill]] %s2994_s23  ;;  %p757_p8 = scmp.lt.s32.totalorder %s2443_s0, 5 }
  0x26   : > { %s3063_s22 = smov (%p48_p5, %s3061_s22), 0  ;;  %p2621_p9 = por %p606_p6, %p605_p4 }
  0x27   : > { %2996 = sst [smem:[#allocation16_spill]] %s3063_s22  ;;  %p758_p10 = pnand %p2066_p7, %p757_p8 }
  0x28   : > { %s2997_s1 = scalar_select %p2621_p9, 1, 0 }
  0x29   : > { %s586_s24 = ssub.s32 %s2439_s29, %s3063_s22  ;;  %s589_s4 = sadd.s32 1, %s2423_s26 }
  0x2a   : > { %2998 = sst [smem:[#allocation17_spill]] %s2997_s1  ;;  %p587_p11 = scmp.eq.s32.totalorder %s586_s24, 0 }
  0x2b   : > { %761 = sbr.rel (%p758_p10) target bundleno = 3004 (0xbbc), region = 104 }
  0x2c   : > { %s2629_s5 = scalar_select %p587_p11, %s2423_s26, %s589_s4  }
  0x2e   : > { %2999 = sst [smem:[#allocation18_spill]] %s2629_s5 }
  0x30   : > { %p881_p12 = scmp.lt.s32.totalorder %s2431_s3, 1  ;;  %p891_p13 = scmp.lt.s32.totalorder %s2427_s27, 1 }
  0x31   : > { %s3002_s2 = sld [smem:[#allocation21_spill]]  ;;  %s3018_s29 = sand.u32 1, %s2419_s25  }
  0x32   : > { %s2635_s28 = scalar_select %p881_p12, %s2431_s3, 1 }
  0x33   : > { %s2638_s1 = scalar_select %p891_p13, %s2427_s27, 1 }
  0x34   : > { %3000 = sst [smem:[#allocation19_spill]] %s2635_s28  ;;  %s2067_s24 = sshll.u32 %s2635_s28, 3 }
  0x35   : > { %s2124_s20 = sshll.u32 %s2638_s1, 4  ;;  %s3004_s4 = sld [smem:[#allocation26_spill]] }
  0x36   : > { %s3005_s7 = sld [smem:[#allocation27_spill]] }
  0x37   : > { %s884_s0 = scalar_lea.vmem %s3002_s2, %s2067_s24  ;;  %s3006_s9 = sld [smem:[#allocation28_spill]] }
  0x38   : > { %s3007_s11 = sld [smem:[#allocation29_spill]] }
  0x39   : > { %s3012_s15 = sld [smem:[#allocation33_spill]] }
  0x3a   : > { %s3013_s22 = sld [smem:[#allocation34_spill]] }
  0x3b   : > { %s2660_s30 = scalar_lea.vmem %s3004_s4, %s2124_s20  ;;  %s3015_s23 = sld [smem:[#allocation36_spill]] }
  0x3c   : > { %s2665_s2 = scalar_lea.vmem %s3005_s7, %s2124_s20  ;;  %s3014_s7 = sld [smem:[#allocation35_spill]] }
  0x3d   : > { %s2674_s19 = scalar_lea.vmem %s3006_s9, %s2124_s20  ;;  %s3016_s14 = sld [smem:[#allocation37_spill]] }
  0x3e   : > { %s2683_s26 = scalar_lea.vmem %s3007_s11, %s2124_s20  ;;  %s3019_s4 = sld [smem:[#allocation9_spill]] }
  0x3f   : > { %3008 = sst [smem:[#allocation20_spill]] %s2683_s26  ;;  %s2700_s16 = scalar_lea.vmem %s3012_s15, %s2124_s20 }
  0x40   : > { %s936_s11 = scalar_lea.vmem %s3013_s22, %s2638_s1  ;;  %s2129_s26 = sshll.u32 %s2638_s1, 5 }
  0x41   : > { %s944_s24 = scalar_lea.vmem %s3015_s23, %s2638_s1  ;;  %s3017_s15 = sld [smem:[#allocation38_spill]] }
  0x42   : > { %s2710_s12 = scalar_lea.vmem %s3014_s7, %s2129_s26  ;;  %s2726_s22 = scalar_lea.vmem [#allocation4], %s3018_s29 }
  0x43   : > { %s947_s28 = scalar_lea.vmem %s3016_s14, %s2638_s1 }
  0x44   : > { %p2080_p0 = scmp.ne.s32.totalorder %s3019_s4, 0 }
  0x45   : > { %s3020_s14 = sld [smem:[#allocation24_spill]] (!%p2080_p0) }
  0x46   : > { %955 = sbr.rel (%p2080_p0) target bundleno = 385 (0x181), region = 108  ;;  %s3021_s23 = sld [smem:[#allocation25_spill]] (!%p2080_p0) }
  0x47   : > { %s950_s13 = scalar_lea.vmem %s3017_s15, %s2638_s1 }
  0x4b   : > { %v956_v0 = vld [vmem:[%s884_s0] sm:$0xff]  ;;  %vm959_vm0 = vcmask 261120  }
  0x4c   : > { %v960_v1 = vsel %vm959_vm0, %v956_v0, 0.0  ;;  %v2081_v11 = vld [vmem:[%s3020_s14] ss:$0 sm:$0xff] }
  0x4d   : > { %961 = vadd.xlane.f32.xlu0 %v960_v1  ;;  %v2082_v13 = vld [vmem:[%s3021_s23] ss:$0 sm:$0xff] }
  0xd6   : > { %v962_v2 = vpop.xlane.xlu0 %961 }
  0xd7   : > { %v964_v3 = vmul.f32 0.03125, %v962_v2 }
  0xd9   : > { %v965_v4 = vsub.f32 %v956_v0, %v964_v3 }
  0xdb   : > { %v966_v5 = vmul.f32 %v965_v4, %v965_v4 }
  0xdd   : > { %v967_v6 = vsel %vm959_vm0, %v966_v5, 0.0 }
  0xde   : > { %968 = vadd.xlane.f32.xlu0 %v967_v6 }
 0x167   : > { %v969_v7 = vpop.xlane.xlu0 %968 }
 0x168   : > { %v970_v8 = vmul.f32 0.03125, %v969_v7 }
 0x16a   : > { %v971_v9 = vadd.f32 1e-06, %v970_v8 }
 0x16c   : > { %2319 = vrsqrt.f32 %v971_v9 }
 0x179   : > { %v2320_v10 = vpop.eup %2319 }
 0x17a   : > { %v973_v12 = vmul.f32 %v2320_v10, %v965_v4 }
 0x17c   : > { %v980_v14 = vmul.f32 %v2081_v11, %v973_v12 }
 0x17e   : > { %v987_v15 = vadd.f32 %v2082_v13, %v980_v14 }
 0x180   : > { %988 = vst.msk [vmem:[#allocation2] sm:$0xff] %vm959_vm0, %v987_v15 }
 0x181 PF: > { %v2321_v16 = vld [vmem:[%s2665_s2 + $0x8] sm:$0xff]   ;;  %v2445_v17 = vmov 0.0   ;;  %v2323_v19 = vld [vmem:[%s2665_s2] sm:$0xff]   ;;  %vm2446_vm1 = vmmov 0   ;;  %vm1014_vm2 = vcmask 261120   ;;  %s3022_s26 = scalar_lea.vmem %s2938_s8, %s2638_s1  ;;  %s3023_s21 = scalar_lea.vmem %s2936_s6, %s2638_s1  ;;  %vm1195_vm3 = vcmask 130048  }
 0x182   : > { %2169 = vmatprep.subr.bf16.mxu1 %v2445_v17  ;;  %2161 = vmatprep.subr.bf16.mxu0 %v2445_v17  ;;  %v2322_v18 = vld [vmem:[%s2660_s30 + $0x8] sm:$0xff]   ;;  %v2324_v20 = vld [vmem:[%s2660_s30] sm:$0xff]   ;;  %s2447_s3 = smov 112   ;;  %s3024_s18 = sld [smem:[#allocation19_spill]]  ;;  %vm1242_vm4 = vcmask 64512   ;;  %vm1258_vm5 = vcmask 1043456  }
 0x183   : > { %2170 = vmatpush3.bf16.msra.mxu1 %v2321_v16  ;;  %2173 = vmatprep.mubr.msk.bf16.mxu1 %vm2446_vm1, %v2445_v17  ;;  %v2087_v23 = vld [vmem:[%s3022_s26] ss:$0 sm:$0xff]  ;;  %v2325_v39 = vld [vmem:[%s2674_s19 + $0x8] sm:$0xff]   ;;  %s3025_s27 = sld [smem:[#allocation22_spill]]  ;;  %s3027_s9 = scalar_lea.vmem %s2940_s10, %s2638_s1  ;;  %vm1303_vm6 = vcmask 125952   ;;  %vm1425_vm7 = vcmask 257152  }
 0x184   : > { %2162 = vmatpush3.bf16.msra.mxu0 %v2322_v18  ;;  %2171 = vmatprep.subr.bf16.mxu1 %v2445_v17  ;;  %v2083_v24 = vld [vmem:[%s3023_s21] ss:$0 sm:$0xff]  ;;  %s3028_s14 = sld [smem:[#allocation20_spill]]  ;;  %s2448_s15 = smov 16   ;;  %vm1641_vm8 = vcmask 523264  }
 0x185   : > { %2163 = vmatprep.subr.bf16.mxu0 %v2445_v17  ;;  %2165 = vmatprep.mubr.msk.bf16.mxu0 %vm2446_vm1, %v2445_v17  ;;  %v2326_v40 = vld [vmem:[%s2674_s19] sm:$0xff]   ;;  %s3029_s30 = sld [smem:[#allocation30_spill]] }
 0x186   : > { %v2091_v62 = vld [vmem:[%s3027_s9] ss:$0 sm:$0xff]  ;;  %s3031_s5 = sld [smem:[#allocation31_spill]] }
 0x187   : > { %v2750_v21 = vld [vmem:[#allocation2] sm:$0xff]  ;;  %2172 = vmatpush3.bf16.msra.mxu1 %v2323_v19  ;;  %s3039_s23 = sld [smem:[#allocation9_spill]] }
 0x188   : > { %v990_v22 = vpack.c.bf16 %v2750_v21, %v2750_v21  ;;  %2164 = vmatpush3.bf16.msra.mxu0 %v2324_v20  ;;  %2185 = vmatprep.subr.bf16.mxu1 %v2445_v17 }
 0x189   : > { %2177 = vmatprep.subr.bf16.mxu0 %v2445_v17  ;;  %s3026_s29 = scalar_lea.vmem %s3025_s27, %s3024_s18 }
 0x18a   : > { %2174 = vmatmul.mubr.msk.bf16.vlgmr.msra.gmra.mxu1 %vm1014_vm2, %v990_v22  ;;  %v2095_v44 = vld [vmem:[%s3026_s29] ss:$0 sm:$0xff] }
 0x18b   : > { %2166 = vmatmul.mubr.msk.bf16.vlgmr.msra.gmra.mxu0 %vm1014_vm2, %v990_v22  ;;  %2187 = vmatprep.mubr.msk.bf16.mxu1 %vm2446_vm1, %v2445_v17  ;;  %s3030_s2 = scalar_lea.vmem %s3029_s30, %s2638_s1 }
 0x18c   : > { %2181 = vmatprep.mubr.msk.bf16.mxu0 %vm2446_vm1, %v2445_v17  ;;  %2178 = vmatpush3.bf16.msra.mxu0 %v2325_v39  ;;  %s3032_s21 = scalar_lea.vmem %s3031_s5, %s2638_s1 }
 0x18d   : > { %2179 = vmatprep.subr.bf16.mxu0 %v2445_v17  ;;  %p2119_p1 = scmp.ne.s32.totalorder %s3039_s23, 1 }
 0x18e   : > { %s3040_s26 = sld [smem:[#allocation23_spill]] (!%p2119_p1) }
 0x18f   : > { %s3041_s17 = sld [smem:[#allocation19_spill]] (!%p2119_p1) }
 0x190   : > { %2180 = vmatpush3.bf16.msra.mxu0 %v2326_v40 }
 0x191   : > { %2191 = vmatprep.subr.bf16.mxu0 %v2445_v17 }
 0x193   : > { %2182 = vmatmul.mubr.msk.bf16.vlgmr.msra.gmra.mxu0 %vm1014_vm2, %v990_v22 }
 0x194   : > { %2193 = vmatprep.mubr.msk.bf16.mxu0 %vm2446_vm1, %v2445_v17 }
 0x195   : > { %s3042_s5 = scalar_lea.vmem (!%p2119_p1), %s3040_s26, %s3041_s17 }
 0x24a   : > { %v1116_v25 = vpop.f32.mrf.mxu1 }
 0x24b   : > { %v1117_v26 = vadd.f32 %v2087_v23, %v1116_v25  ;;  %v1052_v27 = vpop.f32.mrf.mxu0 }
 0x24c   : > { %v1053_v28 = vadd.f32 %v2083_v24, %v1052_v27  ;;  %v2175_v29 = vpop.f32.mrf.mxu1 }
 0x24d   : > { %v1186_v30 = vpack.c.bf16 %v1117_v26, %v1117_v26  ;;  %v2167_v31 = vpop.f32.mrf.mxu0  ;;  %v2328_v29 = vld [vmem:[%s3028_s14] sm:$0xff]  }
 0x24e   : > { %v1058_v32 = vmul.f32 0.25, %v1053_v28  ;;  %v1119_v33 = vpop.f32.mrf.mxu1  ;;  %v2327_v28 = vld [vmem:[%s3028_s14 + $0x8] sm:$0xff]  }
 0x24f   : > { %v1200_v34 = vsel %vm1195_vm3, %v1186_v30, 0  ;;  %1309 = vrot.lane.b32.xlu0 %v1186_v30, %s2447_s3  ;;  %v1055_v35 = vpop.f32.mrf.mxu0 }
 0x250   : > { %v1185_v36 = vpack.c.bf16 %v1058_v32, %v1058_v32  ;;  %v2176_v37 = vpop.f32.mrf.mxu1  ;;  %2186 = vmatpush3.bf16.xpose.msra.mxu1 %v1200_v34 }
 0x251   : > { %v2168_v38 = vpop.f32.mrf.mxu0  ;;  %2197 = vmatprep.subr.bf16.mxu1 %v2445_v17  ;;  %v2101_v37 = vld [vmem:[%s3030_s2] ss:$0 sm:$0xff] }
 0x253   : > { %1306 = vrot.lane.b32.xlu0 %v1185_v36, %s2447_s3  ;;  %v1179_v63 = vpop.f32.mrf.mxu0 }
 0x254   : > { %v1180_v0 = vadd.f32 %v2091_v62, %v1179_v63  ;;  %v2332_v62 = vld [vmem:[%s2710_s12 + $0x10] sm:$0xff]   ;;  %v2333_v63 = vld [vmem:[%s2710_s12 + $0x8] sm:$0xff]  }
 0x255   : > { %v2183_v1 = vpop.f32.mrf.mxu0 }
 0x256   : > { %v1187_v2 = vpack.c.bf16 %v1180_v0, %v1180_v0  ;;  %v2334_v0 = vld [vmem:[%s2710_s12] sm:$0xff]  }
 0x257   : > { %2188 = vmatmul.mubr.msk.bf16.vlgmr.msra.gmra.mxu1 %vm1195_vm3, %v1185_v36  ;;  %v1182_v3 = vpop.f32.mrf.mxu0  ;;  %v2107_v1 = vld [vmem:[%s936_s11] ss:$0 sm:$0xff] }
 0x258   : > { %2199 = vmatprep.mubr.msk.bf16.mxu1 %vm2446_vm1, %v2445_v17  ;;  %v1260_v4 = vsel %vm1258_vm5, %v1187_v2, 0 }
 0x259   : > { %v2184_v5 = vpop.f32.mrf.mxu0  ;;  %2192 = vmatpush3.bf16.msra.mxu0 %v1260_v4 }
 0x25a   : > { %2203 = vmatprep.subr.bf16.mxu0 %v2445_v17 }
 0x2c1   : > { %v1310_v41 = vpop.permute.xlu0 %1309 }
 0x2c2   : > { %v1315_v42 = vsel %vm1195_vm3, %v1310_v41, 0 }
 0x2c3   : > { %2198 = vmatpush3.bf16.xpose.msra.mxu1 %v1315_v42 }
 0x2c4   : > { %2209 = vmatprep.subr.bf16.mxu1 %v2445_v17 }
 0x2c5   : > { %v1307_v43 = vpop.permute.xlu0 %1306 }
 0x2ca   : > { %2200 = vmatmul.mubr.msk.bf16.vlgmr.msra.gmra.mxu1 %vm1195_vm3, %v1307_v43 }
 0x2cb   : > { %2213 = vmatprep.mubr.msk.bf16.mxu1 %vm2446_vm1, %v2445_v17  ;;  %2210 = vmatpush3.bf16.msra.mxu1 %v2327_v28 }
 0x2cc   : > { %2211 = vmatprep.subr.bf16.mxu1 %v2445_v17 }
 0x2cf   : > { %2212 = vmatpush3.bf16.msra.mxu1 %v2328_v29 }
 0x2d0   : > { %2225 = vmatprep.subr.bf16.mxu1 %v2445_v17 }
 0x317   : > { %v1236_v45 = vpop.f32.mrf.mxu1 }
 0x318   : > { %v1237_v46 = vadd.f32 %v2095_v44, %v1236_v45 }
 0x319   : > { %v2189_v47 = vpop.f32.mrf.mxu1 }
 0x31a   : > { %v1243_v48 = vsel %vm1242_vm4, %v1237_v46, -inf }
 0x31b   : > { %1244 = vmax.xlane.f32.xlu1 %v1243_v48  ;;  %v1239_v49 = vpop.f32.mrf.mxu1 }
 0x31d   : > { %v2190_v50 = vpop.f32.mrf.mxu1 }
 0x31e   : > { %v2329_v50 = vld [vmem:[%s2700_s16 + $0x8] sm:$0xff]  }
 0x38a   : > { %v1351_v51 = vpop.f32.mrf.mxu1 }
 0x38b   : > { %v1352_v52 = vadd.f32 %v2095_v44, %v1351_v51  ;;  %v2330_v51 = vld [vmem:[%s2700_s16] sm:$0xff]   ;;  %s3033_s16 = sld [smem:[#allocation32_spill]] }
 0x38c   : > { %v2201_v53 = vpop.f32.mrf.mxu1 }
 0x38d   : > { %v1357_v54 = vsel %vm1242_vm4, %v1352_v52, -inf }
 0x38e   : > { %1358 = vmax.xlane.f32.xlu1 %v1357_v54  ;;  %v1354_v55 = vpop.f32.mrf.mxu1 }
 0x38f   : > { %v2105_v55 = vld [vmem:[%s3032_s21] ss:$0 sm:$0xff] }
 0x390   : > { %v2202_v56 = vpop.f32.mrf.mxu1 }
 0x391   : > { %s3034_s19 = scalar_lea.vmem %s3033_s16, %s2638_s1 }
 0x3a4   : > { %v1245_v57 = vpop.xlane.xlu1 %1244 }
 0x3a5   : > { %v1246_v58 = vsub.f32 %v1237_v46, %v1245_v57  ;;  %v2106_v57 = vld [vmem:[%s3034_s19] ss:$0 sm:$0xff] }
 0x3a7   : > { %v1247_v59 = vmul.f32 1.442695, %v1246_v58 }
 0x3a9   : > { %2335 = vpow2.f32 %v1247_v59 }
 0x3b6   : > { %v2336_v60 = vpop.eup %2335 }
 0x3b7   : > { %v1249_v61 = vsel %vm1242_vm4, %v2336_v60, 0.0 }
 0x3b8   : > { %1250 = vadd.xlane.f32.xlu0 %v1249_v61  ;;  %v2331_v61 = vld [vmem:[%s2710_s12 + $0x18] sm:$0xff]  }
 0x417   : > { %v1359_v6 = vpop.xlane.xlu1 %1358 }
 0x418   : > { %v1360_v7 = vsub.f32 %v1352_v52, %v1359_v6 }
 0x41a   : > { %v1361_v8 = vmul.f32 1.442695, %v1360_v7 }
 0x41c   : > { %2337 = vpow2.f32 %v1361_v8 }
 0x429   : > { %v2338_v9 = vpop.eup %2337 }
 0x42a   : > { %v1363_v10 = vsel %vm1242_vm4, %v2338_v9, 0.0 }
 0x42b   : > { %1364 = vadd.xlane.f32.xlu1 %v1363_v10 }
 0x43c   : > { %1370 = vrot.lane.b32.xlu1 %v1187_v2, %s2447_s3 }
 0x441   : > { %v1251_v11 = vpop.xlane.xlu0 %1250 }
 0x442   : > { %2339 = vrcp.f32 %v1251_v11 }
 0x44f   : > { %v2340_v12 = vpop.eup %2339 }
 0x450   : > { %v1253_v13 = vmul.f32 %v2340_v12, %v2336_v60 }
 0x452   : > { %v1254_v14 = vpack.c.bf16 %v1253_v13, %v1253_v13 }
 0x454   : > { %2194 = vmatmul.mubr.msk.bf16.vlgmr.msra.gmra.mxu0 %vm1242_vm4, %v1254_v14 }
 0x455   : > { %2205 = vmatprep.mubr.msk.bf16.mxu0 %vm2446_vm1, %v2445_v17 }
 0x4b4   : > { %v1365_v15 = vpop.xlane.xlu1 %1364 }
 0x4b5   : > { %2341 = vrcp.f32 %v1365_v15 }
 0x4b8   : > { %v1371_v16 = vpop.permute.xlu1 %1370 }
 0x4b9   : > { %v1376_v18 = vsel %vm1258_vm5, %v1371_v16, 0  ;;  %v2111_v16 = vld [vmem:[%s944_s24] ss:$0 sm:$0xff] }
 0x4ba   : > { %2204 = vmatpush3.bf16.msra.mxu0 %v1376_v18 }
 0x4bb   : > { %2217 = vmatprep.subr.bf16.mxu0 %v2445_v17 }
 0x4c2   : > { %v2342_v19 = vpop.eup %2341 }
 0x4c3   : > { %v1367_v20 = vmul.f32 %v2342_v19, %v2338_v9 }
 0x4c5   : > { %v1368_v22 = vpack.c.bf16 %v1367_v20, %v1367_v20 }
 0x4c7   : > { %2206 = vmatmul.mubr.msk.bf16.vlgmr.msra.gmra.mxu0 %vm1242_vm4, %v1368_v22 }
 0x4c8   : > { %2221 = vmatprep.mubr.msk.bf16.mxu0 %vm2446_vm1, %v2445_v17  ;;  %2218 = vmatpush3.bf16.msra.mxu0 %v2329_v50 }
 0x4c9   : > { %2219 = vmatprep.subr.bf16.mxu0 %v2445_v17 }
 0x4cc   : > { %2220 = vmatpush3.bf16.msra.mxu0 %v2330_v51 }
 0x514   : > { %v1296_v23 = vpop.f32.mrf.mxu0 }
 0x515   : > { %v1302_v24 = vpack.c.bf16 %v1296_v23, %v1296_v23 }
 0x516   : > { %v2195_v25 = vpop.f32.mrf.mxu0 }
 0x517   : > { %1304 = vst.msk [vmem:[#allocation3] sm:$0xf] %vm1303_vm6, %v1302_v24 }
 0x518   : > { %v1299_v26 = vpop.f32.mrf.mxu0 }
 0x51a   : > { %v2196_v27 = vpop.f32.mrf.mxu0 }
 0x587   : > { %v1412_v30 = vpop.f32.mrf.mxu0 }
 0x588   : > { %v2130_v31 = vpack.c.bf16 %v1412_v30, %v1412_v30 }
 0x589   : > { %v2207_v32 = vpop.f32.mrf.mxu0 }
 0x58a   : > { %1422 = vrot.lane.b32.xlu1 %v2130_v31, %s2448_s15 }
 0x58b   : > { %v1415_v33 = vpop.f32.mrf.mxu0 }
 0x58d   : > { %v2208_v34 = vpop.f32.mrf.mxu0 }
 0x5fc   : > { %v1423_v35 = vpop.permute.xlu1 %1422 }
 0x5fd   : > { %1426 = vst.msk [vmem:[#allocation3] sm:$0xf] %vm1425_vm7, %v1423_v35  ;;  %v2117_v35 = vld [vmem:[%s947_s28] ss:$0 sm:$0xff] }
 0x604   : > { %v1427_v36 = vld [vmem:[#allocation3] sm:$0xf] }
 0x605   : > { %2214 = vmatmul.mubr.msk.bf16.vlgmr.msra.gmra.mxu1 %vm1014_vm2, %v1427_v36 }
 0x606   : > { %2233 = vmatprep.mubr.msk.bf16.mxu1 %vm2446_vm1, %v2445_v17  ;;  %2226 = vmatpush3.bf16.msra.mxu1 %v2331_v61 }
 0x607   : > { %2227 = vmatprep.subr.bf16.mxu1 %v2445_v17 }
 0x60a   : > { %2228 = vmatpush3.bf16.msra.mxu1 %v2332_v62 }
 0x60b   : > { %2229 = vmatprep.subr.bf16.mxu1 %v2445_v17 }
 0x60e   : > { %2230 = vmatpush3.bf16.msra.mxu1 %v2333_v63 }
 0x60f   : > { %2231 = vmatprep.subr.bf16.mxu1 %v2445_v17 }
 0x612   : > { %2232 = vmatpush3.bf16.msra.mxu1 %v2334_v0 }
 0x6c5   : > { %v1488_v38 = vpop.f32.mrf.mxu1 }
 0x6c6   : > { %v1489_v39 = vadd.f32 %v2101_v37, %v1488_v38  ;;  %v2118_v37 = vld [vmem:[%s950_s13] ss:$0 sm:$0xff] }
 0x6c7   : > { %v2215_v40 = vpop.f32.mrf.mxu1 }
 0x6c8   : > { %v1494_v41 = vadd.f32 %v1489_v39, %v2750_v21 }
 0x6c9   : > { %v1491_v42 = vpop.f32.mrf.mxu1 }
 0x6ca   : > { %v1497_v43 = vsel %vm1014_vm2, %v1494_v41, 0.0 }
 0x6cb   : > { %1498 = vadd.xlane.f32.xlu1 %v1497_v43  ;;  %v2216_v44 = vpop.f32.mrf.mxu1 }
 0x754   : > { %v1499_v45 = vpop.xlane.xlu1 %1498 }
 0x755   : > { %v1501_v46 = vmul.f32 0.03125, %v1499_v45 }
 0x757   : > { %v1502_v47 = vsub.f32 %v1494_v41, %v1501_v46 }
 0x759   : > { %v1503_v48 = vmul.f32 %v1502_v47, %v1502_v47 }
 0x75b   : > { %v1504_v49 = vsel %vm1014_vm2, %v1503_v48, 0.0 }
 0x75c   : > { %1505 = vadd.xlane.f32.xlu0 %v1504_v49 }
 0x7e5   : > { %v1506_v21 = vpop.xlane.xlu0 %1505 }
 0x7e6   : > { %v1507_v52 = vmul.f32 0.03125, %v1506_v21 }
 0x7e8   : > { %v1508_v53 = vadd.f32 1e-06, %v1507_v52 }
 0x7ea   : > { %2343 = vrsqrt.f32 %v1508_v53 }
 0x7f7   : > { %v2344_v54 = vpop.eup %2343 }
 0x7f8   : > { %v1510_v56 = vmul.f32 %v2344_v54, %v1502_v47 }
 0x7fa   : > { %v1517_v58 = vmul.f32 %v2105_v55, %v1510_v56 }
 0x7fc   : > { %v1524_v59 = vadd.f32 %v2106_v57, %v1517_v58 }
 0x7fe   : > { %v1525_v60 = vpack.c.bf16 %v1524_v59, %v1524_v59 }
 0x800   : > { %2222 = vmatmul.mubr.msk.bf16.vlgmr.msra.gmra.mxu0 %vm1014_vm2, %v1525_v60 }
 0x8c0   : > { %v1586_v2 = vpop.f32.mrf.mxu0 }
 0x8c1   : > { %v1587_v3 = vadd.f32 %v2107_v1, %v1586_v2 }
 0x8c2   : > { %v2223_v4 = vpop.f32.mrf.mxu0 }
 0x8c3   : > { %v1593_v5 = vmul.f32 0.044715, %v1587_v3  ;;  %v1592_v17 = vmul.f32 0.5, %v1587_v3 }
 0x8c4   : > { %v1589_v6 = vpop.f32.mrf.mxu0 }
 0x8c5   : > { %v1594_v7 = vmul.f32 %v1593_v5, %v1587_v3 }
 0x8c6   : > { %v2224_v8 = vpop.f32.mrf.mxu0 }
 0x8c7   : > { %v1595_v9 = vmul.f32 %v1594_v7, %v1587_v3 }
 0x8c9   : > { %v1596_v10 = vadd.f32 %v1595_v9, %v1587_v3 }
 0x8cb   : > { %v1597_v11 = vmul.f32 0.7978846, %v1596_v10 }
 0x8cd   : > { %2345 = vtanh.f32 %v1597_v11 }
 0x8da   : > { %v2346_v12 = vpop.eup %2345 }
 0x8db   : > { %v1599_v13 = vadd.f32 1.0, %v2346_v12 }
 0x8dd   : > { %v1600_v14 = vmul.f32 %v1599_v13, %v1592_v17 }
 0x8df   : > { %v1601_v15 = vpack.c.bf16 %v1600_v14, %v1600_v14 }
 0x8e1   : > { %2234 = vmatmul.mubr.msk.bf16.vlgmr.msra.gmra.mxu1 %vm1641_vm8, %v1601_v15 }
 0x9a1   : > { %v1679_v18 = vpop.f32.mrf.mxu1 }
 0x9a2   : > { %v1680_v19 = vadd.f32 %v2111_v16, %v1679_v18 }
 0x9a3   : > { %v2235_v20 = vpop.f32.mrf.mxu1 }
 0x9a4   : > { %v1685_v22 = vadd.f32 %v1680_v19, %v1524_v59 }
 0x9a5   : > { %v1682_v23 = vpop.f32.mrf.mxu1 }
 0x9a6   : > { %v1688_v24 = vsel %vm1014_vm2, %v1685_v22, 0.0 }
 0x9a7   : > { %1689 = vadd.xlane.f32.xlu0 %v1688_v24  ;;  %v2236_v25 = vpop.f32.mrf.mxu1 }
 0xa30   : > { %v1690_v26 = vpop.xlane.xlu0 %1689 }
 0xa31   : > { %v1691_v27 = vmul.f32 0.03125, %v1690_v26 }
 0xa33   : > { %v1692_v28 = vsub.f32 %v1685_v22, %v1691_v27 }
 0xa35   : > { %v1693_v29 = vmul.f32 %v1692_v28, %v1692_v28 }
 0xa37   : > { %v1694_v30 = vsel %vm1014_vm2, %v1693_v29, 0.0 }
 0xa38   : > { %1695 = vadd.xlane.f32.xlu0 %v1694_v30 }
 0xac1   : > { %v1696_v31 = vpop.xlane.xlu0 %1695 }
 0xac2   : > { %v1697_v32 = vmul.f32 0.03125, %v1696_v31 }
 0xac4   : > { %v1698_v33 = vadd.f32 1e-06, %v1697_v32 }
 0xac6   : > { %2347 = vrsqrt.f32 %v1698_v33 }
 0xad3   : > { %v2348_v34 = vpop.eup %2347 }
 0xad4   : > { %v1700_v36 = vmul.f32 %v2348_v34, %v1692_v28 }
 0xad6   : > { %v1707_v38 = vmul.f32 %v2117_v35, %v1700_v36  ;;  %1719 = sbr.rel (%p2119_p1) target bundleno = 2978 (0xba2), region = 112 }
 0xad8   : > { %v1714_v39 = vadd.f32 %v2118_v37, %v1707_v38 }
 0xada   : > { %1715 = vst.msk [vmem:[#allocation2] sm:$0xff] %vm1014_vm2, %v1714_v39 }
 0xadb   : > { %v1720_v40 = vld [vmem:[%s3042_s5] sm:$0x1]  ;;  %vm1794_vm9 = vcmask 57344   ;;  %v2449_v41 = vmov 0.0   ;;  %vm2450_vm10 = vmmov 0   ;;  %vm1801_vm11 = vcmask 253952  }
 0xadc   : > { %2237 = vmatprep.subr.mxu0 %v2449_v41  ;;  %2239 = vmatprep.mubr.msk.f32.mxu0 %vm2450_vm10, %v2449_v41  ;;  %v1795_v42 = vsel %vm1794_vm9, %v1720_v40, 0.0 }
 0xadd   : > { %2238 = vmatpush3.msra.mxu0 %v1714_v39  ;;  %1796 = vadd.xlane.f32.xlu0 %v1795_v42 }
 0xade   : > { %2240 = vmatmul.mubr.msk.f32.vlgmr.msra.gmra.mxu0 %vm1242_vm4, %v1720_v40 }
 0xb66   : > { %v1797_v43 = vpop.xlane.xlu0 %1796 }
 0xb67   : > { %v1798_v44 = vmax.f32 %v1797_v43, 1e-06 }
 0xb69   : > { %2349 = vrcp.f32 %v1798_v44 }
 0xb76   : > { %v2350_v45 = vpop.eup %2349 }
 0xb9e   : > { %v1790_v46 = vpop.f32.mrf.mxu0 }
 0xb9f   : > { %v1800_v47 = vmul.f32 %v2350_v45, %v1790_v46 }
 0xba0   : > { %v2241_v48 = vpop.f32.mrf.mxu0 }
 0xba1   : > { %1802 = vst.msk [vmem:[%s2726_s22] sm:$0x1] %vm1801_vm11, %v1800_v47 }
 0xba2 PF: > { %s3043_s13 = sld [smem:[#allocation10_spill]]  ;;  %s1816_s19 = sshll.u32 %s2726_s22, 4  ;;  %s1817_s19 = int_to_ptr.vmem [resolvable:$true] %s1816_s19 }
 0xba3   : > { %s3045_s18 = sld [smem:[#allocation39_spill]]  ;;  %s3046_s20 = sand.u32 1, %s2419_s25  }
 0xba4   : > { %s1804_s27 = scalar_lea.sflag [#allocation5], %s3046_s20  ;;  %s2351_s29 = scalar_lea.vmem %s1817_s19, 16 }
 0xba5   : > { %p2352_p2 = scmp.ne.s32.totalorder %s1817_s19, %s2351_s29  ;;  %s2451_s11 = smov [#allocation4]  }
 0xba6   : > { %s2355_s12 = sshll.u32 %s2451_s11, 4  ;;  %s2356_s12 = int_to_ptr.vmem [resolvable:$false] %s2355_s12 }
 0xba7   : > { %p2353_p4 = pnand %p2352_p2, %p2611_p3  ;;  %s2357_s4 = scalar_lea.vmem %s2356_s12, 32 }
 0xba8   : > { %s2121_s28 = sshll.u32 %s3043_s13, 4  ;;  %p2358_p6 = scmp.lt.s32.totalorder %s1817_s19, %s2356_s12 }
 0xba9   : > { %s1814_s16 = scalar_lea.hbm %s3045_s18, %s2121_s28  ;;  %p2354_p5 = pneg %p2353_p4 }
 0xbaa   : > { %p2359_p7 = scmp.lt.s32.totalorder %s2357_s4, %s2351_s29 }
 0xbac   : > { %p2360_p8 = por %p2359_p7, %p2358_p6 }
 0xbae   : > { %p2361_p10 = pnand %p2360_p8, %p2354_p5 }
 0xbb0   : > { %2364 = shalt.err (!%p2361_p10)
}
 0xbb1   : > { %s2365_s24 = scalar_lea.hbm %s1814_s16, 16  ;;  %s2369_s9 = scalar_lea.hbm %s3045_s18, 32 }
 0xbb2   : > { %p2366_p11 = scmp.ne.s32.totalorder %s1814_s16, %s2365_s24  ;;  %p2370_p0 = scmp.lt.s32.totalorder %s1814_s16, %s3045_s18 }
 0xbb3   : > { %p2371_p1 = scmp.lt.s32.totalorder %s2369_s9, %s2365_s24 }
 0xbb4   : > { %p2367_p12 = pnand %p2366_p11, %p2611_p3 }
 0xbb5   : > { %p2372_p2 = por %p2371_p1, %p2370_p0 }
 0xbb6   : > { %p2368_p13 = pneg %p2367_p12 }
 0xbb8   : > { %p2373_p4 = pnand %p2372_p2, %p2368_p13 }
 0xbba   : > { %2376 = shalt.err (!%p2373_p4)
}
 0xbbb   : > { %2242 = dma.vmem_to_hbm [thread:$0]  (%p2611_p3), %s1817_s19, 16, %s1814_s16, %s1804_s27  }
 0xbbc PF: > { %s3047_s0 = sld [smem:[#allocation13_spill]] }
 0xbbd   : > { %s3048_s23 = sld [smem:[#allocation7_spill]] }
 0xbc2   : > { %p2248_p5 = scmp.ge.s32.totalorder %s3047_s0, 2 }
 0xbc3   : > { %s1828_s2 = sand.u32 1, %s3048_s23  }
 0xbc4   : > { %p2245_p6 = pnand %p2248_p5, %p2621_p9  ;;  %s1829_s26 = scalar_lea.sflag [#allocation5], %s1828_s2 }
 0xbc6   : > { %p2246_p7 = pneg %p2245_p6 }
 0xbc8   : > { %2410 = dma.done.wait (%p2246_p7), %s1829_s26, 16  }
 0xbc9   : > { %2412 = vsyncadd (%p2246_p7), %s1829_s26, 4294967280  ;;  %s34_s0 = sadd.s32 1, %s3047_s0   ;;  %s3050_s17 = sld [smem:[#allocation8_spill]] }
 0xbca   : > { %p31_p8 = scmp.ge.s32.totalorder %s34_s0, 6   ;;  %s3051_s26 = sld [smem:[#allocation18_spill]] }
 0xbcb   : > { %s3052_s27 = sld [smem:[#allocation11_spill]]  ;;  %s3056_s2 = smov %s2419_s25 }
 0xbcc   : > { %s3053_s3 = sld [smem:[#allocation12_spill]]  ;;  %33 = sbr.rel (!%p31_p8) target bundleno = 25 (0x19), region = 201 }
 0xbcd   : > { %s3054_s28 = sld [smem:[#allocation14_spill]] }
 0xbce   : > { %s3055_s29 = sld [smem:[#allocation16_spill]] }
 0xbcf   : > { %s3057_s25 = smov %s3050_s17 }
 0xbd1   :  { %1833 = vsyncpa [#allocation5], 1 }
 0xbd2   :  { %1835 = vsyncpa [#allocation5 + $0x1], 1 }

</bundles_post_ra>
